<compile_context>
chip_gen: v7x
topology: tpu7x:2x2x1
jax: 0.10.0
libtpu: 0.0.40
codegen_flags: <defaults>
</compile_context>

<pallas_src>
import functools

import jax
import jax.numpy as jnp
from jax.experimental import pallas as pl
from jax.experimental.pallas import tpu as pltpu


def _round_up(x, m):
    return ((x + m - 1) // m) * m


# ----------------------------------------------------------------------------
# Kernel: 5 matmuls (expand + 2 residual blocks x 2 convs), bias add, ReLU and
# the two residual adds, all on one (TB, C) batch tile resident in VMEM.
# ----------------------------------------------------------------------------
def _spbert_kernel(x_ref, w_ref, b_ref, o_ref):
    # x_ref: (TB, K)   w_ref: (5, K, C)   b_ref: (5, 1, C)   o_ref: (TB, C)
    def conv_bn_relu(h, i):
        w = w_ref[i]                           # (K, C), static first-axis index
        if w.shape[0] != h.shape[1]:           # layers 1..4 only need (C, C)
            w = w[: h.shape[1], :]
        y = jnp.dot(h, w,
                    preferred_element_type=jnp.float32,
                    precision=jax.lax.Precision.HIGHEST)
        y = y + b_ref[i]                       # (1, C) broadcast (folded BN bias)
        return jnp.maximum(y, 0.0)

    h = conv_bn_relu(x_ref[...].astype(jnp.float32), 0)   # expand conv/bn/relu
    for blk in range(2):                                   # num_layers * N = 2
        res = h
        f = conv_bn_relu(h, 1 + 2 * blk)
        h = res + conv_bn_relu(f, 2 + 2 * blk)
    o_ref[...] = h.astype(o_ref.dtype)


@functools.partial(jax.jit, static_argnums=(4,))
def _forward_impl(pos_2d, bone_angle, w_slab, b_slab, channels):
    B = pos_2d.shape[0]
    # view(B, V*C, 1) + cat(dim=1)  ==  flatten & concat along channels.
    x = jnp.concatenate(
        [pos_2d.reshape(B, -1), bone_angle.reshape(B, -1)], axis=1
    ).astype(jnp.float32)
    c_in = x.shape[1]

    n_layers, K, Cp = w_slab.shape            # K, Cp are 128-multiples already

    # Pad batch to a sublane multiple; tile at 128 rows if the batch is large.
    TB = 128 if B >= 128 else _round_up(B, 8)
    B_pad = _round_up(B, TB)
    x = jnp.pad(x, ((0, B_pad - B), (0, K - c_in)))

    out = pl.pallas_call(
        _spbert_kernel,
        out_shape=jax.ShapeDtypeStruct((B_pad, Cp), jnp.float32),
        grid=(B_pad // TB,),
        in_specs=[
            pl.BlockSpec((TB, K), lambda i: (i, 0)),
            pl.BlockSpec((n_layers, K, Cp), lambda i: (0, 0, 0)),
            pl.BlockSpec((n_layers, 1, Cp), lambda i: (0, 0, 0)),
        ],
        out_specs=pl.BlockSpec((TB, Cp), lambda i: (i, 0)),
        compiler_params=pltpu.CompilerParams(
            dimension_semantics=("parallel",)),
    )(x, w_slab, b_slab)

    # back to PyTorch layout (B, channels, 1)
    return out[:B, :channels, None]


def spbert_forward(pos_2d, bone_angle, params):
    return _forward_impl(pos_2d, bone_angle,
                         params["w_slab"], params["b_slab"],
                         params["channels"])


# ----------------------------------------------------------------------------
# Deterministic parameter construction (mirrors Model.__init__ shapes).
# Conv1d(k=1, bias=False) weight (out, in, 1) is stored pre-transposed (in, out)
# with the BatchNorm1d running-stat affine folded in:
#   scale = gamma / sqrt(var + eps);  w_folded = w * scale;  bias = beta - mean*scale
# then zero-padded to lane/sublane-friendly sizes and packed into two slabs.
# ----------------------------------------------------------------------------
def make_params(key, in_channels, channels, eps=1e-5):
    num_conv_layers = 4                        # num_layers(1) * N(2) * 2 convs

    def make_layer(k, c_in, c_out):
        kw, kg, kb, km, kv = jax.random.split(k, 5)
        w = jax.random.normal(kw, (c_in, c_out), jnp.float32) * 0.1
        gamma = 1.0 + 0.1 * jax.random.normal(kg, (c_out,), jnp.float32)
        beta = 0.1 * jax.random.normal(kb, (c_out,), jnp.float32)
        mean = 0.1 * jax.random.normal(km, (c_out,), jnp.float32)
        var = 1.0 + 0.1 * jax.random.uniform(kv, (c_out,), jnp.float32)
        scale = gamma / jnp.sqrt(var + eps)
        return w * scale[None, :], beta - mean * scale   # BN folded into (w, b)

    keys = jax.random.split(key, 1 + num_conv_layers)
    layers = [make_layer(keys[0], in_channels, channels)]
    layers += [make_layer(keys[1 + i], channels, channels)
               for i in range(num_conv_layers)]

    Cp = _round_up(channels, 128)
    K = max(_round_up(in_channels, 128), Cp)
    w_slab, b_slab = [], []
    for w, b in layers:
        w_slab.append(jnp.zeros((K, Cp), jnp.float32)
                      .at[: w.shape[0], : w.shape[1]].set(w))
        b_slab.append(jnp.zeros((1, Cp), jnp.float32)
                      .at[0, : b.shape[0]].set(b))
    return {
        "w_slab": jnp.stack(w_slab),           # (5, K, Cp)
        "b_slab": jnp.stack(b_slab),           # (5, 1, Cp)
        "channels": channels,
        "folded_layers": layers,               # unpadded, for the reference
    }


def reference_forward(pos_2d, bone_angle, params):
    """Pure-JAX eval-mode reference using the same folded parameters."""
    B = pos_2d.shape[0]
    x = jnp.concatenate(
        [pos_2d.reshape(B, -1), bone_angle.reshape(B, -1)], axis=1
    ).astype(jnp.float32)

    def lyr(h, wb):
        w, b = wb
        return jnp.maximum(
            jnp.dot(h, w, precision=jax.lax.Precision.HIGHEST) + b[None, :],
            0.0)

    layers = params["folded_layers"]
    h = lyr(x, layers[0])
    for blk in range(2):
        res = h
        f = lyr(h, layers[1 + 2 * blk])
        h = res + lyr(f, layers[2 + 2 * blk])
    return h[..., None]


if __name__ == "__main__":
    key = jax.random.PRNGKey(0)
    k_pos, k_bone, k_par = jax.random.split(key, 3)

    # small shapes consistent with the forward: pos_2d (B,V1,C1), bone_angle (B,V2,C2)
    B, V1, C1 = 2, 4, 2
    V2, C2 = 4, 2
    channels = 32
    in_channels = V1 * C1 + V2 * C2          # 16

    pos_2d = jax.random.normal(k_pos, (B, V1, C1), jnp.float32)
    bone_angle = jax.random.normal(k_bone, (B, V2, C2), jnp.float32)
    params = make_params(k_par, in_channels, channels)

    out = spbert_forward(pos_2d, bone_angle, params)
    jax.block_until_ready(out)
    assert out.shape == (B, channels, 1), out.shape

    ref = reference_forward(pos_2d, bone_angle, params)
    assert jnp.allclose(out, ref, atol=1e-4, rtol=1e-4), \
        float(jnp.max(jnp.abs(out - ref)))

    print("KERNEL_OK")
</pallas_src>

<mosaic_0001>
module attributes {stable_mosaic.version = 11 : i64} {
  func.func @_spbert_kernel(%arg0: i32, %arg1: memref<8x128xf32, #tpu.memory_space<vmem>>, %arg2: memref<5x128x128xf32, #tpu.memory_space<vmem>>, %arg3: memref<5x1x128xf32, #tpu.memory_space<vmem>>, %arg4: memref<8x128xf32, #tpu.memory_space<vmem>>) attributes {dimension_semantics = [#tpu.dimension_semantics<parallel>], iteration_bounds = array<i64: 1>, scalar_prefetch = 0 : i64, scratch_operands = 0 : i64, tpu.core_type = #tpu.core_type<tc>, window_params = [{transform_indices = @transform_0, window_bounds = array<i64: 8, 128>}, {pipeline_mode = #tpu.pipeline_mode<synchronous>, transform_indices = @transform_1, window_bounds = array<i64: 5, 128, 128>}, {pipeline_mode = #tpu.pipeline_mode<synchronous>, transform_indices = @transform_2, window_bounds = array<i64: 5, 1, 128>}, {transform_indices = @transform_3, window_bounds = array<i64: 8, 128>}]} {
    %c0 = arith.constant 0 : index
    %c0_0 = arith.constant 0 : index
    %0 = vector.load %arg1[%c0, %c0_0] : memref<8x128xf32, #tpu.memory_space<vmem>>, vector<8x128xf32>
    %c0_1 = arith.constant 0 : index
    %c0_2 = arith.constant 0 : index
    %c0_3 = arith.constant 0 : index
    %1 = vector.load %arg2[%c0_1, %c0_2, %c0_3] : memref<5x128x128xf32, #tpu.memory_space<vmem>>, vector<1x128x128xf32>
    %2 = vector.shape_cast %1 : vector<1x128x128xf32> to vector<128x128xf32>
    %cst = arith.constant dense<0.000000e+00> : vector<8x128xf32>
    %3 = tpu.matmul %0, %2, %cst {dimension_numbers = #tpu.dot_dimension_numbers<[1], [0], [0], [1], [0, 0, 1, 1], [], []>, precision = #tpu.contract_precision<fp32>} : vector<8x128xf32>, vector<128x128xf32>, vector<8x128xf32> -> vector<8x128xf32>
    %c0_4 = arith.constant 0 : index
    %c0_5 = arith.constant 0 : index
    %c0_6 = arith.constant 0 : index
    %4 = vector.load %arg3[%c0_4, %c0_5, %c0_6] : memref<5x1x128xf32, #tpu.memory_space<vmem>>, vector<1x1x128xf32>
    %5 = vector.shape_cast %4 : vector<1x1x128xf32> to vector<1x128xf32>
    %6 = vector.broadcast %5 : vector<1x128xf32> to vector<8x128xf32>
    %7 = arith.addf %3, %6 : vector<8x128xf32>
    %cst_7 = arith.constant 0.000000e+00 : f32
    %8 = vector.broadcast %cst_7 : f32 to vector<8x128xf32>
    %9 = arith.maximumf %7, %8 : vector<8x128xf32>
    %c1 = arith.constant 1 : index
    %c0_8 = arith.constant 0 : index
    %c0_9 = arith.constant 0 : index
    %10 = vector.load %arg2[%c1, %c0_8, %c0_9] : memref<5x128x128xf32, #tpu.memory_space<vmem>>, vector<1x128x128xf32>
    %11 = vector.shape_cast %10 : vector<1x128x128xf32> to vector<128x128xf32>
    %cst_10 = arith.constant dense<0.000000e+00> : vector<8x128xf32>
    %12 = tpu.matmul %9, %11, %cst_10 {dimension_numbers = #tpu.dot_dimension_numbers<[1], [0], [0], [1], [0, 0, 1, 1], [], []>, precision = #tpu.contract_precision<fp32>} : vector<8x128xf32>, vector<128x128xf32>, vector<8x128xf32> -> vector<8x128xf32>
    %c1_11 = arith.constant 1 : index
    %c0_12 = arith.constant 0 : index
    %c0_13 = arith.constant 0 : index
    %13 = vector.load %arg3[%c1_11, %c0_12, %c0_13] : memref<5x1x128xf32, #tpu.memory_space<vmem>>, vector<1x1x128xf32>
    %14 = vector.shape_cast %13 : vector<1x1x128xf32> to vector<1x128xf32>
    %15 = vector.broadcast %14 : vector<1x128xf32> to vector<8x128xf32>
    %16 = arith.addf %12, %15 : vector<8x128xf32>
    %cst_14 = arith.constant 0.000000e+00 : f32
    %17 = vector.broadcast %cst_14 : f32 to vector<8x128xf32>
    %18 = arith.maximumf %16, %17 : vector<8x128xf32>
    %c2 = arith.constant 2 : index
    %c0_15 = arith.constant 0 : index
    %c0_16 = arith.constant 0 : index
    %19 = vector.load %arg2[%c2, %c0_15, %c0_16] : memref<5x128x128xf32, #tpu.memory_space<vmem>>, vector<1x128x128xf32>
    %20 = vector.shape_cast %19 : vector<1x128x128xf32> to vector<128x128xf32>
    %cst_17 = arith.constant dense<0.000000e+00> : vector<8x128xf32>
    %21 = tpu.matmul %18, %20, %cst_17 {dimension_numbers = #tpu.dot_dimension_numbers<[1], [0], [0], [1], [0, 0, 1, 1], [], []>, precision = #tpu.contract_precision<fp32>} : vector<8x128xf32>, vector<128x128xf32>, vector<8x128xf32> -> vector<8x128xf32>
    %c2_18 = arith.constant 2 : index
    %c0_19 = arith.constant 0 : index
    %c0_20 = arith.constant 0 : index
    %22 = vector.load %arg3[%c2_18, %c0_19, %c0_20] : memref<5x1x128xf32, #tpu.memory_space<vmem>>, vector<1x1x128xf32>
    %23 = vector.shape_cast %22 : vector<1x1x128xf32> to vector<1x128xf32>
    %24 = vector.broadcast %23 : vector<1x128xf32> to vector<8x128xf32>
    %25 = arith.addf %21, %24 : vector<8x128xf32>
    %cst_21 = arith.constant 0.000000e+00 : f32
    %26 = vector.broadcast %cst_21 : f32 to vector<8x128xf32>
    %27 = arith.maximumf %25, %26 : vector<8x128xf32>
    %28 = arith.addf %9, %27 : vector<8x128xf32>
    %c3 = arith.constant 3 : index
    %c0_22 = arith.constant 0 : index
    %c0_23 = arith.constant 0 : index
    %29 = vector.load %arg2[%c3, %c0_22, %c0_23] : memref<5x128x128xf32, #tpu.memory_space<vmem>>, vector<1x128x128xf32>
    %30 = vector.shape_cast %29 : vector<1x128x128xf32> to vector<128x128xf32>
    %cst_24 = arith.constant dense<0.000000e+00> : vector<8x128xf32>
    %31 = tpu.matmul %28, %30, %cst_24 {dimension_numbers = #tpu.dot_dimension_numbers<[1], [0], [0], [1], [0, 0, 1, 1], [], []>, precision = #tpu.contract_precision<fp32>} : vector<8x128xf32>, vector<128x128xf32>, vector<8x128xf32> -> vector<8x128xf32>
    %c3_25 = arith.constant 3 : index
    %c0_26 = arith.constant 0 : index
    %c0_27 = arith.constant 0 : index
    %32 = vector.load %arg3[%c3_25, %c0_26, %c0_27] : memref<5x1x128xf32, #tpu.memory_space<vmem>>, vector<1x1x128xf32>
    %33 = vector.shape_cast %32 : vector<1x1x128xf32> to vector<1x128xf32>
    %34 = vector.broadcast %33 : vector<1x128xf32> to vector<8x128xf32>
    %35 = arith.addf %31, %34 : vector<8x128xf32>
    %cst_28 = arith.constant 0.000000e+00 : f32
    %36 = vector.broadcast %cst_28 : f32 to vector<8x128xf32>
    %37 = arith.maximumf %35, %36 : vector<8x128xf32>
    %c4 = arith.constant 4 : index
    %c0_29 = arith.constant 0 : index
    %c0_30 = arith.constant 0 : index
    %38 = vector.load %arg2[%c4, %c0_29, %c0_30] : memref<5x128x128xf32, #tpu.memory_space<vmem>>, vector<1x128x128xf32>
    %39 = vector.shape_cast %38 : vector<1x128x128xf32> to vector<128x128xf32>
    %cst_31 = arith.constant dense<0.000000e+00> : vector<8x128xf32>
    %40 = tpu.matmul %37, %39, %cst_31 {dimension_numbers = #tpu.dot_dimension_numbers<[1], [0], [0], [1], [0, 0, 1, 1], [], []>, precision = #tpu.contract_precision<fp32>} : vector<8x128xf32>, vector<128x128xf32>, vector<8x128xf32> -> vector<8x128xf32>
    %c4_32 = arith.constant 4 : index
    %c0_33 = arith.constant 0 : index
    %c0_34 = arith.constant 0 : index
    %41 = vector.load %arg3[%c4_32, %c0_33, %c0_34] : memref<5x1x128xf32, #tpu.memory_space<vmem>>, vector<1x1x128xf32>
    %42 = vector.shape_cast %41 : vector<1x1x128xf32> to vector<1x128xf32>
    %43 = vector.broadcast %42 : vector<1x128xf32> to vector<8x128xf32>
    %44 = arith.addf %40, %43 : vector<8x128xf32>
    %cst_35 = arith.constant 0.000000e+00 : f32
    %45 = vector.broadcast %cst_35 : f32 to vector<8x128xf32>
    %46 = arith.maximumf %44, %45 : vector<8x128xf32>
    %47 = arith.addf %28, %46 : vector<8x128xf32>
    %c0_36 = arith.constant 0 : index
    %c0_37 = arith.constant 0 : index
    %48 = vector.load %arg4[%c0_36, %c0_37] : memref<8x128xf32, #tpu.memory_space<vmem>>, vector<8x128xf32>
    tpu.vector_store %arg4[%c0_36, %c0_37], %47 {strides = array<i32>} : memref<8x128xf32, #tpu.memory_space<vmem>>, vector<8x128xf32>,
    return
  }
  func.func @transform_0(%arg0: i32) -> (i32, i32) {
    %c0_i32 = arith.constant 0 : i32
    %c0_i32_0 = arith.constant 0 : i32
    return %arg0, %c0_i32 : i32, i32
  }
  func.func @transform_1(%arg0: i32) -> (i32, i32, i32) {
    %c0_i32 = arith.constant 0 : i32
    %c0_i32_0 = arith.constant 0 : i32
    %c0_i32_1 = arith.constant 0 : i32
    %c0_i32_2 = arith.constant 0 : i32
    return %c0_i32, %c0_i32_0, %c0_i32_1 : i32, i32, i32
  }
  func.func @transform_2(%arg0: i32) -> (i32, i32, i32) {
    %c0_i32 = arith.constant 0 : i32
    %c0_i32_0 = arith.constant 0 : i32
    %c0_i32_1 = arith.constant 0 : i32
    %c0_i32_2 = arith.constant 0 : i32
    return %c0_i32, %c0_i32_0, %c0_i32_1 : i32, i32, i32
  }
  func.func @transform_3(%arg0: i32) -> (i32, i32) {
    %c0_i32 = arith.constant 0 : i32
    %c0_i32_0 = arith.constant 0 : i32
    return %arg0, %c0_i32 : i32, i32
  }
}

</mosaic_0001>

<bundles_post_ra>
// kernel: _forward_impl.1
= control target key start
LH: loop header
LB: loop body
LE: loop exit
PB: predicated region body
PF: predicated region fallthrough
CT: control target
= control target key end

     0   :  { %8 = vsyncpa [#allocation3], 0  ;;  %s5743_s12 = smov [#allocation2]   ;;  %s7251_s0 = inlined_call_operand.vmem [shape: f32[8,128], index: 0, kind: input, shape index: {}]   ;;  %s7252_s1 = inlined_call_operand.hbm [shape: f32[5,128,128], index: 1, kind: input, shape index: {}]   ;;  %s7253_s2 = inlined_call_operand.vmem [shape: f32[5,1,128], index: 2, kind: input, shape index: {}]   ;;  %s7254_s3 = inlined_call_operand.vmem [shape: f32[8,128], index: 3, kind: output, shape index: {}]  }
   0x1   :  { %s16_s13 = sshll.u32 %s5743_s12, 4  ;;  %s5719_s16 = scalar_lea.hbm %s7252_s1, 10240  ;;  %s17_s13 = int_to_ptr.vmem [resolvable:$true] %s16_s13 }
   0x2   :  { %p5720_p0 = scmp.ne.s32.totalorder %s7252_s1, %s5719_s16  ;;  %p5723_p1 = scmp.lt.u32.totalorder %s5719_s16, %s7252_s1 }
   0x4   :  { %p5725_p2 = pnand %p5723_p1, %p5720_p0 }
   0x6   :  { %5728 = shalt.err (!%p5725_p2)
}
   0x7   :  { %s5729_s21 = scalar_lea.vmem %s17_s13, 10240  ;;  %p5734_p4 = scmp.lt.s32.totalorder %s17_s13, %s17_s13 }
   0x8   :  { %p5730_p3 = scmp.ne.s32.totalorder %s17_s13, %s5729_s21  ;;  %p5735_p5 = scmp.lt.s32.totalorder %s5729_s21, %s5729_s21 }
   0xa   :  { %p5736_p6 = por %p5735_p5, %p5734_p4 }
   0xc   :  { %p5737_p7 = pnand %p5736_p6, %p5730_p3 }
   0xe   :  { %5740 = shalt.err (!%p5737_p7)
}
   0xf   :  { %s5744_s22 = smov 128   ;;  %s5745_s23 = smov 8  }
  0x10   :  { %22 = dma.hbm_to_vmem [thread:$0]  %s7252_s1, 10240, %s17_s13, [#allocation3], %s5744_s22, %s5744_s22, %s5745_s23  }
  0x11   :  { %5741 = dma.done.wait [#allocation3], 10240  }
  0x12   :  { %5742 = vsyncadd [#allocation3], 4294957056  ;;  %v7271_v0 = vmov 0.0|0.0   ;;  %vm5747_vm0 = vmmov 0   ;;  %v7265_v1 = vmov 0.0   ;;  %v29_v2 = vld [vmem:[#allocation2] sm:$0xff] }
  0x13   :  { %4939 = vmatprep.subr.bf16.mxu1 %v7271_v0  ;;  %5011 = vmatprep.subr.bf16.mxu0 %v7271_v0  ;;  %v30_v3 = vld [vmem:[#allocation2 + $0x8] sm:$0xff]  ;;  %v31_v4 = vld [vmem:[#allocation2 + $0x10] sm:$0xff]  ;;  %v53_v5 = vand.u32 4294901760, %v29_v2  ;;  %v32_v7 = vld [vmem:[#allocation2 + $0x18] sm:$0xff] }
  0x14   :  { %3921 = vmatprep.mubr.msk.f32.mxu1 %vm5747_vm0, %v7265_v1  ;;  %4026 = vmatprep.mubr.msk.f32.mxu0 %vm5747_vm0, %v7265_v1  ;;  %v56_v6 = vand.u32 4294901760, %v30_v3  ;;  %v59_v8 = vand.u32 4294901760, %v31_v4  ;;  %v62_v9 = vand.u32 4294901760, %v32_v7  ;;  %v33_v10 = vld [vmem:[#allocation2 + $0x20] sm:$0xff]  ;;  %v34_v11 = vld [vmem:[#allocation2 + $0x28] sm:$0xff]  ;;  %v5795_v16 = vld [vmem:[#allocation2 + $0x30] sm:$0xff] }
  0x15   :  { %v65_v14 = vand.u32 4294901760, %v33_v10  ;;  %v68_v15 = vand.u32 4294901760, %v34_v11  ;;  %v5797_v17 = vld [vmem:[#allocation2 + $0x38] sm:$0xff]  ;;  %v71_v19 = vand.u32 4294901760, %v5795_v16  ;;  %v37_v21 = vld [vmem:[#allocation2 + $0x40] sm:$0xff]  ;;  %v38_v22 = vld [vmem:[#allocation2 + $0x48] sm:$0xff]  ;;  %v5818_v27 = vsub.f32 %v29_v2, %v53_v5 }
  0x16   :  { %v5787_v12 = vpack.c.bf16 %v56_v6, %v53_v5  ;;  %v5791_v13 = vpack.c.bf16 %v62_v9, %v59_v8  ;;  %v74_v20 = vand.u32 4294901760, %v5797_v17  ;;  %v77_v24 = vand.u32 4294901760, %v37_v21  ;;  %v28_v26 = vld [vmem:[%s7251_s0] sm:$0xff]  ;;  %v5824_v29 = vld [vmem:[#allocation2 + $0x50] sm:$0xff]  ;;  %v5826_v30 = vld [vmem:[#allocation2 + $0x58] sm:$0xff] }
  0x17   :  { %v5801_v18 = vpack.c.bf16 %v68_v15, %v65_v14  ;;  %v80_v25 = vand.u32 4294901760, %v38_v22  ;;  %v5820_v28 = vsub.f32 %v30_v3, %v56_v6  ;;  %v5828_v31 = vand.u32 4294901760, %v28_v26  ;;  %v5842_v37 = vld [vmem:[#allocation2 + $0x60] sm:$0xff]  ;;  %v5844_v38 = vld [vmem:[#allocation2 + $0x68] sm:$0xff]  ;;  %v5863_v46 = vld [vmem:[#allocation2 + $0x70] sm:$0xff] }
  0x18   :  { %4941 = vmatpush3.bf16.msra.mxu1 %v5787_v12  ;;  %5013 = vmatpush3.bf16.msra.mxu0 %v5787_v12  ;;  %v5813_v23 = vpack.c.bf16 %v74_v20, %v71_v19  ;;  %v5830_v32 = vsub.f32 %v31_v4, %v59_v8  ;;  %v83_v34 = vand.u32 4294901760, %v5824_v29  ;;  %v86_v35 = vand.u32 4294901760, %v5826_v30  ;;  %v5865_v47 = vld [vmem:[#allocation2 + $0x78] sm:$0xff]  ;;  %v5896_v63 = vld [vmem:[#allocation2 + $0x80] sm:$0xff]  ;;  %v5908_v4 = vld [vmem:[#allocation2 + $0x88] sm:$0xff] }
  0x19   :  { %4942 = vmatprep.subr.bf16.mxu1 %v7271_v0  ;;  %5014 = vmatprep.subr.bf16.mxu0 %v7271_v0  ;;  %v5834_v33 = vpack.c.bf16 %v80_v25, %v77_v24  ;;  %v5838_v36 = vsub.f32 %v32_v7, %v62_v9  ;;  %v146_v39 = vand.u32 4294901760, %v5818_v27  ;;  %v153_v40 = vand.u32 4294901760, %v5820_v28  ;;  %v5921_v9 = vld [vmem:[#allocation2 + $0x90] sm:$0xff] }
  0x1a   :  { %v5848_v41 = vsub.f32 %v33_v10, %v65_v14  ;;  %v5851_v42 = vsub.f32 %v28_v26, %v5828_v31  ;;  %v5859_v43 = vpack.c.bf16 %v86_v35, %v83_v34  ;;  %v89_v44 = vand.u32 4294901760, %v5842_v37  ;;  %v5923_v10 = vld [vmem:[#allocation2 + $0x98] sm:$0xff] }
  0x1b   :  { %v7267_v45 = vand.u32 4294901760, %v5844_v38  ;;  %v160_v48 = vand.u32 4294901760, %v5830_v32  ;;  %v5868_v49 = vsub.f32 %v34_v11, %v68_v15  ;;  %v147_v50 = vsub.f32 %v5818_v27, %v146_v39 }
  0x1c   :  { %4944 = vmatpush3.bf16.msra.mxu1 %v5791_v13  ;;  %5016 = vmatpush3.bf16.msra.mxu0 %v5791_v13  ;;  %v154_v51 = vsub.f32 %v5820_v28, %v153_v40  ;;  %v167_v52 = vand.u32 4294901760, %v5838_v36  ;;  %v7258_v53 = vand.u32 4294901760, %v5863_v46  ;;  %v7256_v54 = vand.u32 4294901760, %v5865_v47 }
  0x1d   :  { %4945 = vmatprep.subr.bf16.mxu1 %v7271_v0  ;;  %5017 = vmatprep.subr.bf16.mxu0 %v7271_v0  ;;  %v135_v55 = vand.u32 4294901760, %v5851_v42  ;;  %v5884_v56 = vpack.c.bf16 %v7267_v45, %v89_v44  ;;  %v5889_v57 = vsub.f32 %v5830_v32, %v160_v48  ;;  %v7262_v58 = vand.u32 4294901760, %v5848_v41 }
  0x1e   :  { %v148_v59 = vand.u32 4294901760, %v147_v50  ;;  %v155_v60 = vand.u32 4294901760, %v154_v51  ;;  %v168_v61 = vsub.f32 %v5838_v36, %v167_v52  ;;  %v7260_v62 = vand.u32 4294901760, %v5868_v49  ;;  %v5952_v51 = vld [vmem:[#allocation2 + $0xb8] sm:$0xff] }
  0x1f   :  { %v5901_v2 = vsub.f32 %v5795_v16, %v71_v19  ;;  %v5906_v3 = vsub.f32 %v5797_v17, %v74_v20  ;;  %v5910_v5 = vsub.f32 %v37_v21, %v77_v24  ;;  %v5912_v6 = vsub.f32 %v38_v22, %v80_v25  ;;  %v5932_v17 = vld [vmem:[#allocation2 + $0xa0] sm:$0xff]  ;;  %v5934_v19 = vld [vmem:[#allocation2 + $0xa8] sm:$0xff]  ;;  %v5942_v25 = vld [vmem:[#allocation2 + $0xb0] sm:$0xff] }
  0x20   :  { %4947 = vmatpush3.bf16.msra.mxu1 %v5801_v18  ;;  %5019 = vmatpush3.bf16.msra.mxu0 %v5801_v18  ;;  %v5918_v7 = vpack.c.bf16 %v7256_v54, %v7258_v53  ;;  %v136_v8 = vsub.f32 %v5851_v42, %v135_v55  ;;  %v5036_v11 = vpack.c.bf16 %v153_v40, %v146_v39  ;;  %v162_v14 = vand.u32 4294901760, %v5889_v57 }
  0x21   :  { %4948 = vmatprep.subr.bf16.mxu1 %v7271_v0  ;;  %5020 = vmatprep.subr.bf16.mxu0 %v7271_v0  ;;  %v175_v15 = vsub.f32 %v5848_v41, %v7262_v58  ;;  %v7255_v16 = vand.u32 4294901760, %v5896_v63  ;;  %v4964_v20 = vpack.c.bf16 %v155_v60, %v148_v59  ;;  %v169_v21 = vand.u32 4294901760, %v168_v61 }
  0x22   :  { %v182_v22 = vsub.f32 %v5868_v49, %v7260_v62  ;;  %v7257_v24 = vand.u32 4294901760, %v5908_v4  ;;  %v188_v26 = vand.u32 4294901760, %v5901_v2  ;;  %v7259_v40 = vand.u32 4294901760, %v5921_v9 }
  0x23   :  { %v5948_v39 = vsub.f32 %v5896_v63, %v7255_v16  ;;  %v7261_v50 = vand.u32 4294901760, %v5923_v10  ;;  %v137_v57 = vand.u32 4294901760, %v136_v8  ;;  %v7263_v60 = vand.u32 4294901760, %v5932_v17 }
  0x24   :  { %4950 = vmatpush3.bf16.msra.mxu1 %v5813_v23  ;;  %5022 = vmatpush3.bf16.msra.mxu0 %v5813_v23  ;;  %v5957_v59 = vsub.f32 %v5908_v4, %v7257_v24  ;;  %v7264_v61 = vand.u32 4294901760, %v5934_v19  ;;  %v195_v16 = vand.u32 4294901760, %v5906_v3  ;;  %v5967_v54 = vsub.f32 %v5921_v9, %v7259_v40 }
  0x25   :  { %4951 = vmatprep.subr.bf16.mxu1 %v7271_v0  ;;  %5023 = vmatprep.subr.bf16.mxu0 %v7271_v0  ;;  %v5972_v8 = vsub.f32 %v5923_v10, %v7261_v50  ;;  %v7269_v24 = vand.u32 4294901760, %v5942_v25  ;;  %v5980_v53 = vsub.f32 %v5932_v17, %v7263_v60  ;;  %v7268_v62 = vand.u32 4294901760, %v5952_v51 }
  0x26   :  { %v5985_v40 = vsub.f32 %v5934_v19, %v7264_v61  ;;  %v5991_v50 = vsub.f32 %v5824_v29, %v83_v34  ;;  %v5996_v58 = vsub.f32 %v5826_v30, %v86_v35  ;;  %v5039_v60 = vpack.c.bf16 %v167_v52, %v160_v48 }
  0x27   :  { %v6003_v61 = vsub.f32 %v5942_v25, %v7269_v24  ;;  %v176_v1 = vand.u32 4294901760, %v175_v15  ;;  %v183_v45 = vand.u32 4294901760, %v182_v22  ;;  %v202_v29 = vand.u32 4294901760, %v5910_v5 }
  0x28   :  { %4953 = vmatpush3.bf16.msra.mxu1 %v5834_v33  ;;  %5025 = vmatpush3.bf16.msra.mxu0 %v5834_v33  ;;  %v6009_v34 = vsub.f32 %v5952_v51, %v7268_v62  ;;  %v4967_v30 = vpack.c.bf16 %v169_v21, %v162_v14  ;;  %v189_v35 = vsub.f32 %v5901_v2, %v188_v26  ;;  %v209_v52 = vand.u32 4294901760, %v5912_v6 }
  0x29   :  { %4954 = vmatprep.subr.bf16.mxu1 %v7271_v0  ;;  %5026 = vmatprep.subr.bf16.mxu0 %v7271_v0  ;;  %7318 = vst [vmem:[#allocation5_spill] sm:$0xff] %v6003_v61  ;;  %v196_v48 = vsub.f32 %v5906_v3, %v195_v16  ;;  %v7320_v15 = vand.u32 4294901760, %v5844_v38  ;;  %v7321_v14 = vmov 0.0   ;;  %v7322_v21 = vand.u32 4294901760, %v5848_v41 }
  0x2a   :  { %7319 = vst [vmem:[#allocation6_spill] sm:$0xff] %v6009_v34  ;;  %v7323_v22 = vand.u32 4294901760, %v5868_v49  ;;  %v210_v62 = vsub.f32 %v5912_v6, %v209_v52  ;;  %v223_v24 = vand.u32 4294901760, %v5996_v58 }
  0x2c   :  { %4956 = vmatpush3.bf16.msra.mxu1 %v5859_v43  ;;  %5028 = vmatpush3.bf16.msra.mxu0 %v5859_v43  ;;  %v224_v61 = vsub.f32 %v5996_v58, %v223_v24 }
  0x2d   :  { %4957 = vmatprep.subr.bf16.mxu1 %v7271_v0  ;;  %5029 = vmatprep.subr.bf16.mxu0 %v7271_v0 }
  0x30   :  { %4959 = vmatpush3.bf16.msra.mxu1 %v5884_v56  ;;  %5031 = vmatpush3.bf16.msra.mxu0 %v5884_v56 }
  0x31   :  { %4960 = vmatprep.subr.bf16.mxu1 %v7271_v0  ;;  %5032 = vmatprep.subr.bf16.mxu0 %v7271_v0 }
  0x34   :  { %4962 = vmatpush3.bf16.msra.mxu1 %v5918_v7  ;;  %5034 = vmatpush3.bf16.msra.mxu0 %v5918_v7 }
  0x35   :  { %4963 = vmatprep.subr.bf16.mxu1 %v7271_v0  ;;  %5035 = vmatprep.subr.bf16.mxu0 %v7271_v0 }
  0x37   :  { %3922 = vmatmul.mubr.f32.vlgmr.msra.gmra.mrb[0].mxu1 %v137_v57  ;;  %4027 = vmatmul.mubr.f32.vlgmr.msra.gmra.mrb[0].mxu0 %v135_v55  ;;  %v6019_v55 = vsub.f32 %v5842_v37, %v89_v44  ;;  %v5042_v57 = vpack.c.bf16 %v7323_v22, %v7322_v21  ;;  %v203_v37 = vsub.f32 %v5910_v5, %v202_v29  ;;  %v216_v44 = vand.u32 4294901760, %v5991_v50 }
  0x38   :  { %4965 = vmatpush3.bf16.msra.mxu1 %v4964_v20  ;;  %5037 = vmatpush3.bf16.msra.mxu0 %v5036_v11  ;;  %v6024_v11 = vsub.f32 %v5844_v38, %v7320_v15  ;;  %v4970_v20 = vpack.c.bf16 %v183_v45, %v176_v1  ;;  %v190_v38 = vand.u32 4294901760, %v189_v35  ;;  %v197_v15 = vand.u32 4294901760, %v196_v48 }
  0x39   :  { %4966 = vmatprep.subr.bf16.mxu1 %v7271_v0  ;;  %5038 = vmatprep.subr.bf16.mxu0 %v7271_v0  ;;  %v7324_v1 = vand.u32 4294901760, %v5863_v46  ;;  %v7325_v21 = vand.u32 4294901760, %v5865_v47  ;;  %v204_v35 = vand.u32 4294901760, %v203_v37  ;;  %v217_v48 = vsub.f32 %v5991_v50, %v216_v44 }
  0x3a   :  { %3956 = vmatprep.mubr.msk.f32.mxu1 %vm5747_vm0, %v7321_v14  ;;  %4061 = vmatprep.mubr.msk.f32.mxu0 %vm5747_vm0, %v7321_v14  ;;  %v230_v22 = vand.u32 4294901760, %v6019_v55  ;;  %v4973_v34 = vpack.c.bf16 %v197_v15, %v190_v38  ;;  %v5051_v38 = vpack.c.bf16 %v223_v24, %v216_v44 }
  0x3b   :  { %v6043_v45 = vsub.f32 %v5863_v46, %v7324_v1  ;;  %v237_v46 = vand.u32 4294901760, %v6024_v11  ;;  %v7326_v1 = vmov 0.0|0.0  }
  0x3c   :  { %4968 = vmatpush3.bf16.msra.mxu1 %v4967_v30  ;;  %5040 = vmatpush3.bf16.msra.mxu0 %v5039_v60  ;;  %v6048_v30 = vsub.f32 %v5865_v47, %v7325_v21  ;;  %v5045_v60 = vpack.c.bf16 %v195_v16, %v188_v26  ;;  %v5048_v47 = vpack.c.bf16 %v209_v52, %v202_v29  ;;  %v218_v21 = vand.u32 4294901760, %v217_v48 }
  0x3d   :  { %4969 = vmatprep.subr.bf16.mxu1 %v7271_v0  ;;  %5041 = vmatprep.subr.bf16.mxu0 %v7271_v0  ;;  %v211_v0 = vand.u32 4294901760, %v210_v62  ;;  %v231_v16 = vsub.f32 %v6019_v55, %v230_v22  ;;  %v244_v26 = vand.u32 4294901760, %v6043_v45  ;;  %v238_v62 = vsub.f32 %v6024_v11, %v237_v46 }
  0x3e   :  { %v251_v37 = vand.u32 4294901760, %v6048_v30 }
  0x3f   :  { %v232_v15 = vand.u32 4294901760, %v231_v16  ;;  %v239_v52 = vand.u32 4294901760, %v238_v62  ;;  %v245_v48 = vsub.f32 %v6043_v45, %v244_v26 }
  0x40   :  { %4971 = vmatpush3.bf16.msra.mxu1 %v4970_v20  ;;  %5043 = vmatpush3.bf16.msra.mxu0 %v5042_v57  ;;  %v4976_v20 = vpack.c.bf16 %v211_v0, %v204_v35  ;;  %v225_v57 = vand.u32 4294901760, %v224_v61  ;;  %v5054_v61 = vpack.c.bf16 %v237_v46, %v230_v22  ;;  %v5057_v44 = vpack.c.bf16 %v251_v37, %v244_v26  ;;  %v710_v46 = vld [vmem:[#allocation2 + $0xf8] sm:$0xff] }
  0x41   :  { %4972 = vmatprep.subr.bf16.mxu1 %v7326_v1  ;;  %5044 = vmatprep.subr.bf16.mxu0 %v7326_v1  ;;  %v4982_v0 = vpack.c.bf16 %v239_v52, %v232_v15  ;;  %v4991_v22 = vpack.c.bf16 %v5838_v36, %v5830_v32  ;;  %v7327_v32 = vand.u32 4294901760, %v5896_v63  ;;  %v7334_v63 = vand.u32 4294901760, %v5952_v51  ;;  %v708_v51 = vld [vmem:[#allocation2 + $0xe8] sm:$0xff] }
  0x42   :  { %v4979_v29 = vpack.c.bf16 %v225_v57, %v218_v21  ;;  %v813_v15 = vand.u32 4294901760, %v5948_v39 }
  0x44   :  { %4974 = vmatpush3.bf16.msra.mxu1 %v4973_v34  ;;  %5046 = vmatpush3.bf16.msra.mxu0 %v5045_v60  ;;  %v252_v34 = vsub.f32 %v6048_v30, %v251_v37  ;;  %v246_v60 = vand.u32 4294901760, %v245_v48 }
  0x45   :  { %4975 = vmatprep.subr.bf16.mxu1 %v7326_v1  ;;  %5047 = vmatprep.subr.bf16.mxu0 %v7326_v1 }
  0x46   :  { %v253_v35 = vand.u32 4294901760, %v252_v34 }
  0x48   :  { %4977 = vmatpush3.bf16.msra.mxu1 %v4976_v20  ;;  %5049 = vmatpush3.bf16.msra.mxu0 %v5048_v47  ;;  %v4985_v24 = vpack.c.bf16 %v253_v35, %v246_v60  ;;  %v4988_v47 = vpack.c.bf16 %v5820_v28, %v5818_v27  ;;  %v4994_v27 = vpack.c.bf16 %v5868_v49, %v5848_v41  ;;  %v7329_v41 = vand.u32 4294901760, %v5921_v9  ;;  %v705_v9 = vld [vmem:[#allocation2 + $0xd0] sm:$0xff] }
  0x49   :  { %4978 = vmatprep.subr.bf16.mxu1 %v7326_v1  ;;  %5050 = vmatprep.subr.bf16.mxu0 %v7326_v1  ;;  %v5009_v28 = vpack.c.bf16 %v6048_v30, %v6043_v45  ;;  %v709_v30 = vld [vmem:[#allocation2 + $0xf0] sm:$0xff]  ;;  %v827_v60 = vand.u32 4294901760, %v5967_v54  ;;  %v7286_v35 = vand.u32 4294901760, %v5972_v8 }
  0x4a   :  { %v762_v37 = vand.u32 4294901760, %v709_v30 }
  0x4c   :  { %4980 = vmatpush3.bf16.msra.mxu1 %v4979_v29  ;;  %5052 = vmatpush3.bf16.msra.mxu0 %v5051_v38  ;;  %v765_v38 = vand.u32 4294901760, %v710_v46  ;;  %v820_v29 = vand.u32 4294901760, %v5957_v59  ;;  %v6184_v48 = vsub.f32 %v709_v30, %v762_v37 }
  0x4d   :  { %4981 = vmatprep.subr.bf16.mxu1 %v7326_v1  ;;  %5053 = vmatprep.subr.bf16.mxu0 %v7326_v1 }
  0x4e   :  { %v6182_v52 = vpack.c.bf16 %v765_v38, %v762_v37  ;;  %v6186_v34 = vsub.f32 %v710_v46, %v765_v38 }
  0x50   :  { %4983 = vmatpush3.bf16.msra.mxu1 %v4982_v0  ;;  %5055 = vmatpush3.bf16.msra.mxu0 %v5054_v61  ;;  %v814_v0 = vsub.f32 %v5948_v39, %v813_v15  ;;  %v821_v61 = vsub.f32 %v5957_v59, %v820_v29 }
  0x51   :  { %4984 = vmatprep.subr.bf16.mxu1 %v7326_v1  ;;  %5056 = vmatprep.subr.bf16.mxu0 %v7326_v1 }
  0x54   :  { %4986 = vmatpush3.bf16.msra.mxu1 %v4985_v24  ;;  %5058 = vmatpush3.bf16.msra.mxu0 %v5057_v44  ;;  %v815_v24 = vand.u32 4294901760, %v814_v0  ;;  %v822_v44 = vand.u32 4294901760, %v821_v61 }
  0x55   :  { %4987 = vmatprep.subr.bf16.mxu1 %v7326_v1  ;;  %5059 = vmatprep.subr.bf16.mxu0 %v7326_v1 }
  0x57   :  { %3957 = vmatmul.mubr.f32.vlgmr.msra.gmra.mrb[0].mxu1 %v5828_v31  ;;  %4062 = vmatmul.mubr.f32.vlgmr.msra.gmra.mrb[0].mxu0 %v5828_v31 }
  0x58   :  { %4989 = vmatpush3.bf16.msra.mxu1 %v4988_v47  ;;  %5061 = vmatpush3.bf16.msra.mxu0 %v5787_v12  ;;  %v4997_v12 = vpack.c.bf16 %v5906_v3, %v5901_v2  ;;  %v703_v3 = vld [vmem:[#allocation2 + $0xc0] sm:$0xff]  ;;  %v828_v47 = vsub.f32 %v5967_v54, %v827_v60 }
  0x59   :  { %4990 = vmatprep.subr.bf16.mxu1 %v7326_v1  ;;  %5062 = vmatprep.subr.bf16.mxu0 %v7326_v1 }
  0x5a   :  { %3991 = vmatprep.mubr.msk.f32.mxu1 %vm5747_vm0, %v7321_v14  ;;  %4096 = vmatprep.mubr.msk.f32.mxu0 %vm5747_vm0, %v7321_v14 }
  0x5c   :  { %4992 = vmatpush3.bf16.msra.mxu1 %v4991_v22  ;;  %5064 = vmatpush3.bf16.msra.mxu0 %v5791_v13  ;;  %v5000_v13 = vpack.c.bf16 %v5912_v6, %v5910_v5  ;;  %v744_v5 = vand.u32 4294901760, %v703_v3  ;;  %v835_v22 = vsub.f32 %v5972_v8, %v7286_v35 }
  0x5d   :  { %4993 = vmatprep.subr.bf16.mxu1 %v7326_v1  ;;  %5065 = vmatprep.subr.bf16.mxu0 %v7326_v1 }
  0x5e   :  { %v6166_v21 = vsub.f32 %v703_v3, %v744_v5 }
  0x60   :  { %4995 = vmatpush3.bf16.msra.mxu1 %v4994_v27  ;;  %5067 = vmatpush3.bf16.msra.mxu0 %v5801_v18  ;;  %v5003_v18 = vpack.c.bf16 %v5996_v58, %v5991_v50  ;;  %v7333_v58 = vand.u32 4294901760, %v5942_v25  ;;  %v707_v50 = vld [vmem:[#allocation2 + $0xe0] sm:$0xff]  ;;  %v6204_v27 = vpack.c.bf16 %v822_v44, %v815_v24 }
  0x61   :  { %4996 = vmatprep.subr.bf16.mxu1 %v7326_v1  ;;  %5068 = vmatprep.subr.bf16.mxu0 %v7326_v1 }
  0x62   :  { %v6151_v2 = vpack.c.bf16 %v7334_v63, %v7333_v58  ;;  %v7336_v58 = vld [vmem:[#allocation6_spill] sm:$0xff] }
  0x63   :  { %v7282_v63 = vand.u32 4294901760, %v7336_v58 }
  0x64   :  { %4998 = vmatpush3.bf16.msra.mxu1 %v4997_v12  ;;  %5070 = vmatpush3.bf16.msra.mxu0 %v5813_v23  ;;  %v5006_v23 = vpack.c.bf16 %v6024_v11, %v6019_v55  ;;  %v756_v55 = vand.u32 4294901760, %v707_v50  ;;  %v759_v11 = vand.u32 4294901760, %v708_v51  ;;  %v829_v12 = vand.u32 4294901760, %v828_v47 }
  0x65   :  { %4999 = vmatprep.subr.bf16.mxu1 %v7326_v1  ;;  %5071 = vmatprep.subr.bf16.mxu0 %v7326_v1 }
  0x66   :  { %v6164_v45 = vpack.c.bf16 %v759_v11, %v756_v55  ;;  %v6175_v57 = vsub.f32 %v707_v50, %v756_v55  ;;  %v6177_v62 = vsub.f32 %v708_v51, %v759_v11 }
  0x68   :  { %5001 = vmatpush3.bf16.msra.mxu1 %v5000_v13  ;;  %5073 = vmatpush3.bf16.msra.mxu0 %v5834_v33  ;;  %v7328_v33 = vand.u32 4294901760, %v5908_v4  ;;  %v704_v4 = vld [vmem:[#allocation2 + $0xc8] sm:$0xff]  ;;  %v836_v13 = vand.u32 4294901760, %v835_v22  ;;  %v7277_v44 = vand.u32 4294901760, %v6175_v57  ;;  %v7276_v47 = vand.u32 4294901760, %v6177_v62 }
  0x69   :  { %5002 = vmatprep.subr.bf16.mxu1 %v7326_v1  ;;  %5074 = vmatprep.subr.bf16.mxu0 %v7326_v1  ;;  %v747_v6 = vand.u32 4294901760, %v704_v4 }
  0x6a   :  { %v6120_v36 = vpack.c.bf16 %v7328_v33, %v7327_v32 }
  0x6b   :  { %v6168_v16 = vsub.f32 %v704_v4, %v747_v6 }
  0x6c   :  { %5004 = vmatpush3.bf16.msra.mxu1 %v5003_v18  ;;  %5076 = vmatpush3.bf16.msra.mxu0 %v5859_v43  ;;  %v7330_v43 = vand.u32 4294901760, %v5923_v10  ;;  %v706_v10 = vld [vmem:[#allocation2 + $0xd8] sm:$0xff]  ;;  %v7285_v18 = vand.u32 4294901760, %v5980_v53 }
  0x6d   :  { %5005 = vmatprep.subr.bf16.mxu1 %v7326_v1  ;;  %5077 = vmatprep.subr.bf16.mxu0 %v7326_v1 }
  0x6e   :  { %v6131_v49 = vpack.c.bf16 %v7330_v43, %v7329_v41  ;;  %v842_v32 = vsub.f32 %v5980_v53, %v7285_v18 }
  0x70   :  { %5007 = vmatpush3.bf16.msra.mxu1 %v5006_v23  ;;  %5079 = vmatpush3.bf16.msra.mxu0 %v5884_v56  ;;  %v7284_v23 = vand.u32 4294901760, %v5985_v40  ;;  %v843_v41 = vand.u32 4294901760, %v842_v32 }
  0x71   :  { %5008 = vmatprep.subr.bf16.mxu1 %v7326_v1  ;;  %5080 = vmatprep.subr.bf16.mxu0 %v7326_v1 }
  0x72   :  { %v849_v33 = vsub.f32 %v5985_v40, %v7284_v23 }
  0x74   :  { %5010 = vmatpush3.bf16.msra.mxu1 %v5009_v28  ;;  %5082 = vmatpush3.bf16.msra.mxu0 %v5918_v7  ;;  %v6156_v7 = vpack.c.bf16 %v747_v6, %v744_v5  ;;  %v6208_v28 = vpack.c.bf16 %v836_v13, %v829_v12  ;;  %v850_v43 = vand.u32 4294901760, %v849_v33  ;;  %v863_v5 = vsub.f32 %v7336_v58, %v7282_v63  ;;  %v1371_v63 = vld [vmem:[#allocation2 + $0x148] sm:$0xff] }
  0x75   :  { %5083 = vmatprep.subr.bf16.mxu1 %v7326_v1  ;;  %5227 = vmatprep.subr.bf16.mxu0 %v7326_v1  ;;  %v898_v12 = vsub.f32 %v6175_v57, %v7277_v44  ;;  %v905_v13 = vsub.f32 %v6177_v62, %v7276_v47 }
  0x76   :  { %v5114_v3 = vpack.c.bf16 %v850_v43, %v843_v41  ;;  %v7275_v41 = vand.u32 4294901760, %v6184_v48  ;;  %v7274_v43 = vand.u32 4294901760, %v6186_v34 }
  0x77   :  { %3992 = vmatmul.mubr.f32.vlgmr.msra.gmra.mrb[0].mxu1 %v5851_v42  ;;  %4097 = vmatmul.mubr.f32.vlgmr.msra.gmra.mrb[0].mxu0 %v5828_v31  ;;  %v7331_v31 = vand.u32 4294901760, %v5932_v17  ;;  %v7332_v42 = vand.u32 4294901760, %v5934_v19  ;;  %v750_v17 = vand.u32 4294901760, %v705_v9  ;;  %v753_v19 = vand.u32 4294901760, %v706_v10 }
  0x78   :  { %5085 = vmatpush3.bf16.msra.mxu1 %v6120_v36  ;;  %4131 = vmatprep.mubr.msk.f32.mxu1 %vm5747_vm0, %v7321_v14  ;;  %v899_v32 = vand.u32 4294901760, %v898_v12  ;;  %v906_v33 = vand.u32 4294901760, %v905_v13  ;;  %v5150_v12 = vpack.c.bf16 %v6177_v62, %v6175_v57  ;;  %v5153_v13 = vpack.c.bf16 %v6186_v34, %v6184_v48 }
  0x79   :  { %5086 = vmatprep.subr.bf16.mxu1 %v7326_v1  ;;  %4341 = vmatprep.mubr.msk.f32.mxu0 %vm5747_vm0, %v7321_v14  ;;  %v6143_v56 = vpack.c.bf16 %v7332_v42, %v7331_v31  ;;  %v6160_v25 = vpack.c.bf16 %v753_v19, %v750_v17  ;;  %v6170_v26 = vsub.f32 %v705_v9, %v750_v17  ;;  %v7335_v31 = vld [vmem:[#allocation5_spill] sm:$0xff]  ;;  %v864_v9 = vand.u32 4294901760, %v863_v5 }
  0x7a   :  { %v6172_v20 = vsub.f32 %v706_v10, %v753_v19  ;;  %v7283_v42 = vand.u32 4294901760, %v7335_v31  ;;  %v7281_v10 = vand.u32 4294901760, %v6166_v21  ;;  %v7280_v17 = vand.u32 4294901760, %v6168_v16 }
  0x7b   :  { %v7279_v30 = vand.u32 4294901760, %v6170_v26  ;;  %v912_v5 = vsub.f32 %v6184_v48, %v7275_v41 }
  0x7c   :  { %5088 = vmatpush3.bf16.msra.mxu1 %v6131_v49  ;;  %v856_v4 = vsub.f32 %v7335_v31, %v7283_v42  ;;  %v870_v50 = vsub.f32 %v6166_v21, %v7281_v10  ;;  %v877_v51 = vsub.f32 %v6168_v16, %v7280_v17  ;;  %v7278_v46 = vand.u32 4294901760, %v6172_v20 }
  0x7d   :  { %5089 = vmatprep.subr.bf16.mxu1 %v7326_v1  ;;  %v884_v38 = vsub.f32 %v6170_v26, %v7279_v30 }
  0x7e   :  { %v857_v6 = vand.u32 4294901760, %v856_v4  ;;  %v871_v55 = vand.u32 4294901760, %v870_v50  ;;  %v878_v11 = vand.u32 4294901760, %v877_v51  ;;  %v891_v0 = vsub.f32 %v6172_v20, %v7278_v46 }
  0x7f   :  { %v885_v61 = vand.u32 4294901760, %v884_v38  ;;  %v5126_v4 = vpack.c.bf16 %v906_v33, %v899_v32  ;;  %v5138_v38 = vpack.c.bf16 %v5985_v40, %v5980_v53  ;;  %v3370_v32 = vld [vmem:[%s7253_s2] ss:$0 sm:$0xff] }
  0x80   :  { %5091 = vmatpush3.bf16.msra.mxu1 %v6143_v56  ;;  %v5117_v19 = vpack.c.bf16 %v864_v9, %v857_v6  ;;  %v5120_v37 = vpack.c.bf16 %v878_v11, %v871_v55  ;;  %v892_v24 = vand.u32 4294901760, %v891_v0  ;;  %v919_v6 = vsub.f32 %v6186_v34, %v7274_v43 }
  0x81   :  { %5092 = vmatprep.subr.bf16.mxu1 %v7326_v1  ;;  %v913_v9 = vand.u32 4294901760, %v912_v5  ;;  %v5132_v55 = vpack.c.bf16 %v5957_v59, %v5948_v39  ;;  %v5135_v11 = vpack.c.bf16 %v5972_v8, %v5967_v54  ;;  %v5141_v0 = vpack.c.bf16 %v7336_v58, %v7335_v31 }
  0x82   :  { %v5123_v22 = vpack.c.bf16 %v892_v24, %v885_v61  ;;  %v920_v50 = vand.u32 4294901760, %v919_v6  ;;  %v5144_v61 = vpack.c.bf16 %v6168_v16, %v6166_v21  ;;  %v5147_v24 = vpack.c.bf16 %v6172_v20, %v6170_v26 }
  0x83   :  { %v7338_v39 = vand.u32 4294901760, %v5980_v53  ;;  %v7339_v59 = vand.u32 4294901760, %v5985_v40  ;;  %v7341_v54 = vand.u32 4294901760, %v7336_v58  ;;  %v7344_v53 = vand.u32 4294901760, %v6170_v26  ;;  %v1375_v26 = vld [vmem:[#allocation2 + $0x168] sm:$0xff] }
  0x84   :  { %5094 = vmatpush3.bf16.msra.mxu1 %v6151_v2  ;;  %v5129_v51 = vpack.c.bf16 %v920_v50, %v913_v9  ;;  %v7345_v40 = vand.u32 4294901760, %v6172_v20  ;;  %v7347_v58 = vand.u32 4294901760, %v6177_v62  ;;  %v1426_v20 = vand.u32 4294901760, %v1375_v26  ;;  %v1376_v62 = vld [vmem:[#allocation2 + $0x170] sm:$0xff] }
  0x85   :  { %5095 = vmatprep.subr.bf16.mxu1 %v7326_v1 }
  0x88   :  { %5097 = vmatpush3.bf16.msra.mxu1 %v6156_v7 }
  0x89   :  { %5098 = vmatprep.subr.bf16.mxu1 %v7326_v1 }
  0x8c   :  { %5100 = vmatpush3.bf16.msra.mxu1 %v6160_v25 }
  0x8d   :  { %5101 = vmatprep.subr.bf16.mxu1 %v7326_v1 }
  0x90   :  { %5103 = vmatpush3.bf16.msra.mxu1 %v6164_v45 }
  0x91   :  { %5104 = vmatprep.subr.bf16.mxu1 %v7326_v1 }
  0x94   :  { %5106 = vmatpush3.bf16.msra.mxu1 %v6182_v52 }
  0x95   :  { %5107 = vmatprep.subr.bf16.mxu1 %v7326_v1 }
 0x14a   :  { %v394_v33 = vpop.f32.mrb[0].mxu1  ;;  %v689_v5 = vpop.f32.mrb[0].mxu0 }
 0x14b   :  { %v5659_v6 = vadd.f32 %v3370_v32, %v394_v33  ;;  %v3993_v9 = vpop.f32.mrb[1].mxu1  ;;  %v4098_v50 = vpop.f32.mrb[1].mxu0  ;;  %v1368_v33 = vld [vmem:[#allocation2 + $0x130] sm:$0xff] }
 0x14d   :  { %v5660_v43 = vadd.f32 %v5659_v6, %v689_v5  ;;  %v1369_v5 = vld [vmem:[#allocation2 + $0x138] sm:$0xff]  ;;  %v1370_v6 = vld [vmem:[#allocation2 + $0x140] sm:$0xff] }
 0x14f   :  { %v6275_v41 = vmax.f32 %v5660_v43, 0.0  ;;  %v1367_v43 = vld [vmem:[#allocation2 + $0x128] sm:$0xff] }
 0x150   :  { %v1402_v32 = vand.u32 4294901760, %v1367_v43 }
 0x151   :  { %v6278_v47 = vand.u32 4294901760, %v6275_v41 }
 0x152   :  { %v6322_v35 = vsub.f32 %v1367_v43, %v1402_v32 }
 0x153   :  { %v6282_v44 = vsub.f32 %v6275_v41, %v6278_v47 }
 0x155   :  { %v802_v46 = vand.u32 4294901760, %v6282_v44 }
 0x157   :  { %v803_v30 = vsub.f32 %v6282_v44, %v802_v46 }
 0x159   :  { %v804_v17 = vand.u32 4294901760, %v803_v30  ;;  %v1365_v30 = vld [vmem:[#allocation2 + $0x118] sm:$0xff] }
 0x15b   :  { %4132 = vmatmul.mubr.f32.vlgmr.msra.gmra.mrb[2].mxu1 %v804_v17 }
 0x15c   :  { %5109 = vmatpush3.bf16.msra.mxu1 %v6204_v27  ;;  %4166 = vmatprep.mubr.msk.f32.mxu1 %vm5747_vm0, %v7321_v14  ;;  %v1362_v27 = vld [vmem:[#allocation2 + $0x100] sm:$0xff] }
 0x15d   :  { %5110 = vmatprep.subr.bf16.mxu1 %v7326_v1  ;;  %v1387_v17 = vand.u32 4294901760, %v1362_v27 }
 0x160   :  { %5112 = vmatpush3.bf16.msra.mxu1 %v6208_v28  ;;  %v1363_v28 = vld [vmem:[#allocation2 + $0x108] sm:$0xff] }
 0x161   :  { %5113 = vmatprep.subr.bf16.mxu1 %v7326_v1 }
 0x164   :  { %5115 = vmatpush3.bf16.msra.mxu1 %v5114_v3  ;;  %v1364_v3 = vld [vmem:[#allocation2 + $0x110] sm:$0xff] }
 0x165   :  { %5116 = vmatprep.subr.bf16.mxu1 %v7326_v1 }
 0x168   :  { %5118 = vmatpush3.bf16.msra.mxu1 %v5117_v19  ;;  %v1390_v19 = vand.u32 4294901760, %v1363_v28 }
 0x169   :  { %5119 = vmatprep.subr.bf16.mxu1 %v7326_v1 }
 0x16a   :  { %v6304_v9 = vpack.c.bf16 %v1390_v19, %v1387_v17  ;;  %v6308_v50 = vsub.f32 %v1363_v28, %v1390_v19  ;;  %v1408_v28 = vand.u32 4294901760, %v1369_v5 }
 0x16c   :  { %5121 = vmatpush3.bf16.msra.mxu1 %v5120_v37  ;;  %v1393_v37 = vand.u32 4294901760, %v1364_v3  ;;  %5229 = vmatpush3.bf16.msra.mxu0 %v6304_v9 }
 0x16d   :  { %5122 = vmatprep.subr.bf16.mxu1 %v7326_v1  ;;  %5230 = vmatprep.subr.bf16.mxu0 %v7326_v1 }
 0x16e   :  { %v6310_v10 = vsub.f32 %v1364_v3, %v1393_v37  ;;  %v1414_v3 = vand.u32 4294901760, %v1371_v63 }
 0x170   :  { %5124 = vmatpush3.bf16.msra.mxu1 %v5123_v22  ;;  %v1366_v22 = vld [vmem:[#allocation2 + $0x120] sm:$0xff] }
 0x171   :  { %5125 = vmatprep.subr.bf16.mxu1 %v7326_v1 }
 0x174   :  { %5127 = vmatpush3.bf16.msra.mxu1 %v5126_v4  ;;  %v1396_v4 = vand.u32 4294901760, %v1365_v30 }
 0x175   :  { %5128 = vmatprep.subr.bf16.mxu1 %v7326_v1 }
 0x176   :  { %v6312_v42 = vpack.c.bf16 %v1396_v4, %v1393_v37  ;;  %v6314_v23 = vsub.f32 %v1365_v30, %v1396_v4  ;;  %v6328_v30 = vsub.f32 %v1369_v5, %v1408_v28  ;;  %v1487_v4 = vand.u32 4294901760, %v6308_v50 }
 0x178   :  { %5130 = vmatpush3.bf16.msra.mxu1 %v5129_v51  ;;  %v1399_v51 = vand.u32 4294901760, %v1366_v22  ;;  %5232 = vmatpush3.bf16.msra.mxu0 %v6312_v42 }
 0x179   :  { %5131 = vmatprep.subr.bf16.mxu1 %v7326_v1  ;;  %5233 = vmatprep.subr.bf16.mxu0 %v7326_v1 }
 0x17a   :  { %v6316_v18 = vsub.f32 %v1366_v22, %v1399_v51  ;;  %v6332_v22 = vsub.f32 %v1371_v63, %v1414_v3 }
 0x17b   :  { %4167 = vmatmul.mubr.f32.vlgmr.msra.gmra.mrb[2].mxu1 %v6278_v47 }
 0x17c   :  { %5133 = vmatpush3.bf16.msra.mxu1 %v5132_v55  ;;  %4201 = vmatprep.mubr.msk.f32.mxu1 %vm5747_vm0, %v7321_v14  ;;  %v6306_v55 = vsub.f32 %v1362_v27, %v1387_v17  ;;  %v1405_v27 = vand.u32 4294901760, %v1368_v33  ;;  %v1411_v17 = vand.u32 4294901760, %v1370_v6 }
 0x17d   :  { %5134 = vmatprep.subr.bf16.mxu1 %v7326_v1 }
 0x17e   :  { %v6326_v19 = vsub.f32 %v1368_v33, %v1405_v27  ;;  %v6330_v37 = vsub.f32 %v1370_v6, %v1411_v17  ;;  %v6346_v63 = vpack.c.bf16 %v1408_v28, %v1405_v27  ;;  %v1488_v33 = vsub.f32 %v6308_v50, %v1487_v4 }
 0x17f   :  { %v6481_v28 = vsub.f32 %v1375_v26, %v1426_v20 }
 0x180   :  { %5136 = vmatpush3.bf16.msra.mxu1 %v5135_v11  ;;  %v6338_v11 = vpack.c.bf16 %v1402_v32, %v1399_v51 }
 0x181   :  { %5137 = vmatprep.subr.bf16.mxu1 %v7326_v1 }
 0x182   :  { %5235 = vmatpush3.bf16.msra.mxu0 %v6338_v11 }
 0x183   :  { %5236 = vmatprep.subr.bf16.mxu0 %v7326_v1 }
 0x184   :  { %5139 = vmatpush3.bf16.msra.mxu1 %v5138_v38  ;;  %v6354_v38 = vpack.c.bf16 %v1414_v3, %v1411_v17 }
 0x185   :  { %5140 = vmatprep.subr.bf16.mxu1 %v7326_v1 }
 0x186   :  { %5238 = vmatpush3.bf16.msra.mxu0 %v6346_v63 }
 0x187   :  { %5239 = vmatprep.subr.bf16.mxu0 %v7326_v1 }
 0x188   :  { %5142 = vmatpush3.bf16.msra.mxu1 %v5141_v0  ;;  %v5180_v0 = vpack.c.bf16 %v820_v29, %v813_v15  ;;  %v5186_v15 = vpack.c.bf16 %v7339_v59, %v7338_v39  ;;  %v7340_v29 = vand.u32 4294901760, %v7335_v31  ;;  %v7346_v31 = vand.u32 4294901760, %v6175_v57 }
 0x189   :  { %5143 = vmatprep.subr.bf16.mxu1 %v7326_v1  ;;  %v7299_v39 = vand.u32 4294901760, %v6314_v23 }
 0x18a   :  { %5241 = vmatpush3.bf16.msra.mxu0 %v6354_v38 }
 0x18b   :  { %5242 = vmatprep.subr.bf16.mxu0 %v7326_v1 }
 0x18c   :  { %5145 = vmatpush3.bf16.msra.mxu1 %v5144_v61  ;;  %v7337_v61 = vand.u32 4294901760, %v5972_v8  ;;  %v5189_v8 = vpack.c.bf16 %v7341_v54, %v7340_v29  ;;  %v1502_v29 = vsub.f32 %v6314_v23, %v7299_v39  ;;  %v7298_v54 = vand.u32 4294901760, %v6316_v18 }
 0x18d   :  { %5146 = vmatprep.subr.bf16.mxu1 %v7326_v1 }
 0x190   :  { %5148 = vmatpush3.bf16.msra.mxu1 %v5147_v24  ;;  %v5183_v24 = vpack.c.bf16 %v7337_v61, %v827_v60  ;;  %v7342_v60 = vand.u32 4294901760, %v6166_v21  ;;  %v7348_v21 = vand.u32 4294901760, %v6184_v48  ;;  %v1429_v48 = vand.u32 4294901760, %v1376_v62 }
 0x191   :  { %5149 = vmatprep.subr.bf16.mxu1 %v7326_v1  ;;  %v1489_v61 = vand.u32 4294901760, %v1488_v33 }
 0x192   :  { %v6484_v17 = vsub.f32 %v1376_v62, %v1429_v48 }
 0x194   :  { %5151 = vmatpush3.bf16.msra.mxu1 %v5150_v12  ;;  %v5195_v12 = vpack.c.bf16 %v7345_v40, %v7344_v53 }
 0x195   :  { %5152 = vmatprep.subr.bf16.mxu1 %v7326_v1 }
 0x198   :  { %5154 = vmatpush3.bf16.msra.mxu1 %v5153_v13  ;;  %v5198_v13 = vpack.c.bf16 %v7347_v58, %v7346_v31  ;;  %v7296_v58 = vand.u32 4294901760, %v6326_v19 }
 0x199   :  { %5155 = vmatprep.subr.bf16.mxu1 %v7326_v1 }
 0x19b   :  { %4202 = vmatmul.mubr.f32.vlgmr.msra.gmra.mrb[2].mxu1 %v6282_v44 }
 0x19c   :  { %5157 = vmatpush3.bf16.msra.mxu1 %v6120_v36  ;;  %4236 = vmatprep.mubr.msk.f32.mxu1 %vm5747_vm0, %v7321_v14 }
 0x19d   :  { %5158 = vmatprep.subr.bf16.mxu1 %v7326_v1 }
 0x1a0   :  { %5160 = vmatpush3.bf16.msra.mxu1 %v6131_v49 }
 0x1a1   :  { %5161 = vmatprep.subr.bf16.mxu1 %v7326_v1 }
 0x1a4   :  { %5163 = vmatpush3.bf16.msra.mxu1 %v6143_v56 }
 0x1a5   :  { %5164 = vmatprep.subr.bf16.mxu1 %v7326_v1 }
 0x1a8   :  { %5166 = vmatpush3.bf16.msra.mxu1 %v6151_v2 }
 0x1a9   :  { %5167 = vmatprep.subr.bf16.mxu1 %v7326_v1 }
 0x1ac   :  { %5169 = vmatpush3.bf16.msra.mxu1 %v6156_v7 }
 0x1ad   :  { %5170 = vmatprep.subr.bf16.mxu1 %v7326_v1 }
 0x1b0   :  { %5172 = vmatpush3.bf16.msra.mxu1 %v6160_v25 }
 0x1b1   :  { %5173 = vmatprep.subr.bf16.mxu1 %v7326_v1 }
 0x1b4   :  { %5175 = vmatpush3.bf16.msra.mxu1 %v6164_v45 }
 0x1b5   :  { %5176 = vmatprep.subr.bf16.mxu1 %v7326_v1 }
 0x1b8   :  { %5178 = vmatpush3.bf16.msra.mxu1 %v6182_v52 }
 0x1b9   :  { %5179 = vmatprep.subr.bf16.mxu1 %v7326_v1 }
 0x1bb   :  { %4237 = vmatmul.mubr.f32.vlgmr.msra.gmra.mrb[2].mxu1 %v802_v46  ;;  %v7343_v46 = vand.u32 4294901760, %v6168_v16  ;;  %v7349_v16 = vand.u32 4294901760, %v6186_v34 }
 0x1bc   :  { %5181 = vmatpush3.bf16.msra.mxu1 %v5180_v0  ;;  %4271 = vmatprep.mubr.msk.f32.mxu1 %vm5747_vm0, %v7321_v14 }
 0x1bd   :  { %5182 = vmatprep.subr.bf16.mxu1 %v7326_v1  ;;  %v5192_v44 = vpack.c.bf16 %v7343_v46, %v7342_v60  ;;  %v5201_v43 = vpack.c.bf16 %v7349_v16, %v7348_v21  ;;  %v1503_v46 = vand.u32 4294901760, %v1502_v29  ;;  %v1523_v16 = vsub.f32 %v6326_v19, %v7296_v58 }
 0x1be   :  { %v7289_v29 = vand.u32 4294901760, %v6481_v28 }
 0x1c0   :  { %5184 = vmatpush3.bf16.msra.mxu1 %v5183_v24  ;;  %v1494_v24 = vand.u32 4294901760, %v6310_v10 }
 0x1c1   :  { %5185 = vmatprep.subr.bf16.mxu1 %v7326_v1 }
 0x1c4   :  { %5187 = vmatpush3.bf16.msra.mxu1 %v5186_v15  ;;  %v1495_v15 = vsub.f32 %v6310_v10, %v1494_v24 }
 0x1c5   :  { %5188 = vmatprep.subr.bf16.mxu1 %v7326_v1 }
 0x1c6   :  { %v1496_v60 = vand.u32 4294901760, %v1495_v15 }
 0x1c8   :  { %5190 = vmatpush3.bf16.msra.mxu1 %v5189_v8  ;;  %v7297_v8 = vand.u32 4294901760, %v6322_v35  ;;  %v5255_v40 = vpack.c.bf16 %v1503_v46, %v1496_v60 }
 0x1c9   :  { %5191 = vmatprep.subr.bf16.mxu1 %v7326_v1 }
 0x1ca   :  { %v1516_v53 = vsub.f32 %v6322_v35, %v7297_v8 }
 0x1cc   :  { %5193 = vmatpush3.bf16.msra.mxu1 %v5192_v44  ;;  %v1509_v44 = vsub.f32 %v6316_v18, %v7298_v54  ;;  %v1517_v31 = vand.u32 4294901760, %v1516_v53 }
 0x1cd   :  { %5194 = vmatprep.subr.bf16.mxu1 %v7326_v1 }
 0x1d0   :  { %5196 = vmatpush3.bf16.msra.mxu1 %v5195_v12  ;;  %v1510_v12 = vand.u32 4294901760, %v1509_v44  ;;  %v1572_v44 = vsub.f32 %v6481_v28, %v7289_v29 }
 0x1d1   :  { %5197 = vmatprep.subr.bf16.mxu1 %v7326_v1 }
 0x1d2   :  { %v5258_v21 = vpack.c.bf16 %v1517_v31, %v1510_v12  ;;  %v1573_v12 = vand.u32 4294901760, %v1572_v44  ;;  %v7288_v31 = vand.u32 4294901760, %v6484_v17 }
 0x1d4   :  { %5199 = vmatpush3.bf16.msra.mxu1 %v5198_v13  ;;  %v7295_v13 = vand.u32 4294901760, %v6328_v30 }
 0x1d5   :  { %5200 = vmatprep.subr.bf16.mxu1 %v7326_v1 }
 0x1d8   :  { %5202 = vmatpush3.bf16.msra.mxu1 %v5201_v43  ;;  %v1530_v43 = vsub.f32 %v6328_v30, %v7295_v13 }
 0x1d9   :  { %5203 = vmatprep.subr.bf16.mxu1 %v7326_v1 }
 0x1db   :  { %4272 = vmatmul.mubr.f32.vlgmr.msra.gmra.mrb[2].mxu1 %v6278_v47 }
 0x1dc   :  { %5205 = vmatpush3.bf16.msra.mxu1 %v6120_v36  ;;  %4306 = vmatprep.mubr.msk.f32.mxu1 %vm5747_vm0, %v7321_v14  ;;  %v1372_v36 = vld [vmem:[#allocation2 + $0x150] sm:$0xff] }
 0x1dd   :  { %5206 = vmatprep.subr.bf16.mxu1 %v7326_v1 }
 0x1e0   :  { %5208 = vmatpush3.bf16.msra.mxu1 %v6131_v49  ;;  %v1373_v49 = vld [vmem:[#allocation2 + $0x158] sm:$0xff] }
 0x1e1   :  { %5209 = vmatprep.subr.bf16.mxu1 %v7326_v1 }
 0x1e4   :  { %5211 = vmatpush3.bf16.msra.mxu1 %v6143_v56  ;;  %v1417_v56 = vand.u32 4294901760, %v1372_v36 }
 0x1e5   :  { %5212 = vmatprep.subr.bf16.mxu1 %v7326_v1 }
 0x1e6   :  { %v6475_v5 = vsub.f32 %v1372_v36, %v1417_v56  ;;  %v1524_v36 = vand.u32 4294901760, %v1523_v16 }
 0x1e8   :  { %5214 = vmatpush3.bf16.msra.mxu1 %v6151_v2  ;;  %v1420_v2 = vand.u32 4294901760, %v1373_v49 }
 0x1e9   :  { %5215 = vmatprep.subr.bf16.mxu1 %v7326_v1 }
 0x1ea   :  { %v6477_v6 = vsub.f32 %v1373_v49, %v1420_v2  ;;  %v1531_v49 = vand.u32 4294901760, %v1530_v43 }
 0x1ec   :  { %5217 = vmatpush3.bf16.msra.mxu1 %v6156_v7  ;;  %v6457_v7 = vpack.c.bf16 %v1420_v2, %v1417_v56  ;;  %v7294_v56 = vand.u32 4294901760, %v6330_v37  ;;  %v7293_v2 = vand.u32 4294901760, %v6332_v22 }
 0x1ed   :  { %5218 = vmatprep.subr.bf16.mxu1 %v7326_v1 }
 0x1ee   :  { %5244 = vmatpush3.bf16.msra.mxu0 %v6457_v7  ;;  %v1537_v26 = vsub.f32 %v6330_v37, %v7294_v56 }
 0x1ef   :  { %5245 = vmatprep.subr.bf16.mxu0 %v7326_v1 }
 0x1f0   :  { %5220 = vmatpush3.bf16.msra.mxu1 %v6160_v25  ;;  %v1374_v25 = vld [vmem:[#allocation2 + $0x160] sm:$0xff] }
 0x1f1   :  { %5221 = vmatprep.subr.bf16.mxu1 %v7326_v1 }
 0x1f4   :  { %5223 = vmatpush3.bf16.msra.mxu1 %v6164_v45  ;;  %v1423_v45 = vand.u32 4294901760, %v1374_v25 }
 0x1f5   :  { %5224 = vmatprep.subr.bf16.mxu1 %v7326_v1 }
 0x1f6   :  { %v6461_v57 = vpack.c.bf16 %v1426_v20, %v1423_v45  ;;  %v6479_v27 = vsub.f32 %v1374_v25, %v1423_v45  ;;  %v5261_v25 = vpack.c.bf16 %v1531_v49, %v1524_v36  ;;  %v1544_v45 = vsub.f32 %v6332_v22, %v7293_v2 }
 0x1f7   :  { %v1538_v20 = vand.u32 4294901760, %v1537_v26  ;;  %v1579_v36 = vsub.f32 %v6484_v17, %v7288_v31 }
 0x1f8   :  { %5226 = vmatpush3.bf16.msra.mxu1 %v6182_v52  ;;  %v1377_v52 = vld [vmem:[#allocation2 + $0x178] sm:$0xff]  ;;  %5247 = vmatpush3.bf16.msra.mxu0 %v6461_v57  ;;  %v1545_v62 = vand.u32 4294901760, %v1544_v45  ;;  %v7290_v15 = vand.u32 4294901760, %v6479_v27  ;;  %v5294_v44 = vpack.c.bf16 %v6481_v28, %v6479_v27 }
 0x1f9   :  { %5371 = vmatprep.subr.bf16.mxu1 %v7326_v1  ;;  %v1432_v34 = vand.u32 4294901760, %v1377_v52  ;;  %5248 = vmatprep.subr.bf16.mxu0 %v7326_v1  ;;  %v1580_v26 = vand.u32 4294901760, %v1579_v36 }
 0x1fa   :  { %v1565_v46 = vsub.f32 %v6479_v27, %v7290_v15 }
 0x1fb   :  { %4307 = vmatmul.mubr.f32.vlgmr.msra.gmra.mrb[2].mxu1 %v6278_v47  ;;  %v1480_v47 = vand.u32 4294901760, %v6306_v55  ;;  %v6467_v51 = vpack.c.bf16 %v1432_v34, %v1429_v48  ;;  %v6486_v3 = vsub.f32 %v1377_v52, %v1432_v34  ;;  %v7292_v52 = vand.u32 4294901760, %v6475_v5 }
 0x1fc   :  { %4551 = vmatprep.mubr.msk.f32.mxu1 %vm5747_vm0, %v7321_v14  ;;  %v7291_v48 = vand.u32 4294901760, %v6477_v6  ;;  %v5264_v34 = vpack.c.bf16 %v1545_v62, %v1538_v20  ;;  %v1566_v53 = vand.u32 4294901760, %v1565_v46  ;;  %v5276_v62 = vpack.c.bf16 %v6308_v50, %v6306_v55 }
 0x1fd   :  { %v1481_v32 = vsub.f32 %v6306_v55, %v1480_v47  ;;  %5250 = vmatpush3.bf16.msra.mxu0 %v6467_v51  ;;  %v7287_v16 = vand.u32 4294901760, %v6486_v3  ;;  %v5291_v46 = vpack.c.bf16 %v6477_v6, %v6475_v5  ;;  %v7351_v55 = vand.u32 4294901760, %v6316_v18 }
 0x1fe   :  { %5251 = vmatprep.subr.bf16.mxu0 %v7326_v1  ;;  %v1558_v33 = vsub.f32 %v6477_v6, %v7291_v48  ;;  %v5270_v43 = vpack.c.bf16 %v1573_v12, %v1566_v53  ;;  %v5297_v53 = vpack.c.bf16 %v6486_v3, %v6484_v17  ;;  %v3372_v12 = vld [vmem:[%s7253_s2 + $0x1] ss:$0 sm:$0xff]  ;;  %v7352_v50 = vand.u32 4294901760, %v6322_v35 }
 0x1ff   :  { %v1482_v0 = vand.u32 4294901760, %v1481_v32  ;;  %v1551_v32 = vsub.f32 %v6475_v5, %v7292_v52  ;;  %v1586_v49 = vsub.f32 %v6486_v3, %v7287_v16 }
 0x201   :  { %v6491_v59 = vpack.c.bf16 %v1489_v61, %v1482_v0  ;;  %v1552_v0 = vand.u32 4294901760, %v1551_v32  ;;  %v1559_v61 = vand.u32 4294901760, %v1558_v33  ;;  %v1587_v45 = vand.u32 4294901760, %v1586_v49 }
 0x202   :  { %v5279_v32 = vpack.c.bf16 %v6314_v23, %v6310_v10  ;;  %v5282_v33 = vpack.c.bf16 %v6322_v35, %v6316_v18  ;;  %v7354_v10 = vand.u32 4294901760, %v6328_v30  ;;  %v7357_v35 = vand.u32 4294901760, %v6475_v5  ;;  %v2041_v5 = vld [vmem:[#allocation2 + $0x1d8] sm:$0xff] }
 0x203   :  { %v5267_v60 = vpack.c.bf16 %v1559_v61, %v1552_v0  ;;  %v5273_v20 = vpack.c.bf16 %v1587_v45, %v1580_v26  ;;  %v5285_v0 = vpack.c.bf16 %v6328_v30, %v6326_v19  ;;  %v5288_v61 = vpack.c.bf16 %v6332_v22, %v6330_v37 }
 0x204   :  { %v7358_v18 = vand.u32 4294901760, %v6477_v6  ;;  %v7360_v30 = vand.u32 4294901760, %v6481_v28  ;;  %v2088_v6 = vand.u32 4294901760, %v2041_v5  ;;  %v2043_v28 = vld [vmem:[#allocation2 + $0x1e8] sm:$0xff] }
 0x2ce   :  { %v1356_v36 = vpop.f32.mrb[2].mxu1 }
 0x2cf   :  { %v5661_v49 = vadd.f32 %v3372_v12, %v1356_v36  ;;  %v4308_v26 = vpop.f32.mrb[3].mxu1 }
 0x2d0   :  { %v2037_v26 = vld [vmem:[#allocation2 + $0x1b8] sm:$0xff] }
 0x2d1   :  { %v1360_v45 = vmax.f32 %v5661_v49, 0.0  ;;  %v2036_v49 = vld [vmem:[#allocation2 + $0x1b0] sm:$0xff]  ;;  %v2076_v39 = vand.u32 4294901760, %v2037_v26 }
 0x2d2   :  { %v2073_v54 = vand.u32 4294901760, %v2036_v49 }
 0x2d3   :  { %v6566_v16 = vand.u32 4294901760, %v1360_v45 }
 0x2d5   :  { %v6569_v31 = vsub.f32 %v1360_v45, %v6566_v16 }
 0x2d7   :  { %v1469_v29 = vand.u32 4294901760, %v6569_v31 }
 0x2d9   :  { %v1470_v15 = vsub.f32 %v6569_v31, %v1469_v29 }
 0x2db   :  { %v1471_v48 = vand.u32 4294901760, %v1470_v15 }
 0x2dd   :  { %4342 = vmatmul.mubr.f32.vlgmr.msra.gmra.mrb[2].mxu0 %v1471_v48 }
 0x2de   :  { %5253 = vmatpush3.bf16.msra.mxu0 %v6491_v59  ;;  %4376 = vmatprep.mubr.msk.f32.mxu0 %vm5747_vm0, %v7321_v14  ;;  %v2030_v59 = vld [vmem:[#allocation2 + $0x180] sm:$0xff] }
 0x2df   :  { %5254 = vmatprep.subr.bf16.mxu0 %v7326_v1 }
 0x2e2   :  { %5256 = vmatpush3.bf16.msra.mxu0 %v5255_v40  ;;  %v2031_v40 = vld [vmem:[#allocation2 + $0x188] sm:$0xff] }
 0x2e3   :  { %5257 = vmatprep.subr.bf16.mxu0 %v7326_v1  ;;  %v2058_v48 = vand.u32 4294901760, %v2031_v40 }
 0x2e6   :  { %5259 = vmatpush3.bf16.msra.mxu0 %v5258_v21  ;;  %v2032_v21 = vld [vmem:[#allocation2 + $0x190] sm:$0xff] }
 0x2e7   :  { %5260 = vmatprep.subr.bf16.mxu0 %v7326_v1  ;;  %v2061_v15 = vand.u32 4294901760, %v2032_v21 }
 0x2e9   :  { %v6596_v2 = vsub.f32 %v2032_v21, %v2061_v15  ;;  %v6625_v21 = vpack.c.bf16 %v2076_v39, %v2073_v54 }
 0x2ea   :  { %5262 = vmatpush3.bf16.msra.mxu0 %v5261_v25  ;;  %v2055_v25 = vand.u32 4294901760, %v2030_v59 }
 0x2eb   :  { %5263 = vmatprep.subr.bf16.mxu0 %v7326_v1 }
 0x2ec   :  { %v6590_v45 = vpack.c.bf16 %v2058_v48, %v2055_v25  ;;  %v6592_v52 = vsub.f32 %v2030_v59, %v2055_v25  ;;  %v6609_v59 = vsub.f32 %v2036_v49, %v2073_v54  ;;  %v7350_v54 = vand.u32 4294901760, %v6314_v23 }
 0x2ee   :  { %5265 = vmatpush3.bf16.msra.mxu0 %v5264_v34  ;;  %v2033_v34 = vld [vmem:[#allocation2 + $0x198] sm:$0xff]  ;;  %5373 = vmatpush3.bf16.msra.mxu1 %v6590_v45 }
 0x2ef   :  { %5266 = vmatprep.subr.bf16.mxu0 %v7326_v1  ;;  %5374 = vmatprep.subr.bf16.mxu1 %v7326_v1 }
 0x2f2   :  { %5268 = vmatpush3.bf16.msra.mxu0 %v5267_v60  ;;  %v2034_v60 = vld [vmem:[#allocation2 + $0x1a0] sm:$0xff] }
 0x2f3   :  { %5269 = vmatprep.subr.bf16.mxu0 %v7326_v1  ;;  %v2067_v12 = vand.u32 4294901760, %v2034_v60 }
 0x2f5   :  { %v6600_v13 = vsub.f32 %v2034_v60, %v2067_v12 }
 0x2f6   :  { %5271 = vmatpush3.bf16.msra.mxu0 %v5270_v43  ;;  %v2035_v43 = vld [vmem:[#allocation2 + $0x1a8] sm:$0xff] }
 0x2f7   :  { %5272 = vmatprep.subr.bf16.mxu0 %v7326_v1  ;;  %v2070_v36 = vand.u32 4294901760, %v2035_v43 }
 0x2f9   :  { %v6605_v8 = vsub.f32 %v2035_v43, %v2070_v36 }
 0x2fa   :  { %5274 = vmatpush3.bf16.msra.mxu0 %v5273_v20  ;;  %v2064_v20 = vand.u32 4294901760, %v2033_v34 }
 0x2fb   :  { %5275 = vmatprep.subr.bf16.mxu0 %v7326_v1 }
 0x2fc   :  { %v6598_v56 = vsub.f32 %v2033_v34, %v2064_v20  ;;  %v6603_v58 = vpack.c.bf16 %v2064_v20, %v2061_v15  ;;  %v6748_v15 = vsub.f32 %v2041_v5, %v2088_v6 }
 0x2fd   :  { %4377 = vmatmul.mubr.f32.vlgmr.msra.gmra.mrb[2].mxu0 %v6566_v16 }
 0x2fe   :  { %5277 = vmatpush3.bf16.msra.mxu0 %v5276_v62  ;;  %4411 = vmatprep.mubr.msk.f32.mxu0 %vm5747_vm0, %v7321_v14  ;;  %v6594_v62 = vsub.f32 %v2031_v40, %v2058_v48  ;;  %v6611_v40 = vsub.f32 %v2037_v26, %v2076_v39  ;;  %v5324_v39 = vpack.c.bf16 %v1487_v4, %v1480_v47  ;;  %v7353_v4 = vand.u32 4294901760, %v6326_v19 }
 0x2ff   :  { %5278 = vmatprep.subr.bf16.mxu0 %v7326_v1  ;;  %5376 = vmatpush3.bf16.msra.mxu1 %v6603_v58  ;;  %v5330_v47 = vpack.c.bf16 %v7352_v50, %v7351_v55  ;;  %v7359_v19 = vand.u32 4294901760, %v6479_v27  ;;  %v2042_v27 = vld [vmem:[#allocation2 + $0x1e0] sm:$0xff]  ;;  %v2162_v50 = vand.u32 4294901760, %v6596_v2 }
 0x300   :  { %5377 = vmatprep.subr.bf16.mxu1 %v7326_v1  ;;  %v5333_v23 = vpack.c.bf16 %v7354_v10, %v7353_v4  ;;  %v2155_v49 = vand.u32 4294901760, %v6594_v62 }
 0x302   :  { %5280 = vmatpush3.bf16.msra.mxu0 %v5279_v32  ;;  %v6617_v32 = vpack.c.bf16 %v2070_v36, %v2067_v12  ;;  %v2148_v36 = vand.u32 4294901760, %v6592_v52  ;;  %v2156_v55 = vsub.f32 %v6594_v62, %v2155_v49 }
 0x303   :  { %5281 = vmatprep.subr.bf16.mxu0 %v7326_v1 }
 0x304   :  { %5379 = vmatpush3.bf16.msra.mxu1 %v6617_v32  ;;  %v2157_v10 = vand.u32 4294901760, %v2156_v55 }
 0x305   :  { %5380 = vmatprep.subr.bf16.mxu1 %v7326_v1 }
 0x306   :  { %5283 = vmatpush3.bf16.msra.mxu0 %v5282_v33  ;;  %v5327_v33 = vpack.c.bf16 %v7350_v54, %v1494_v24  ;;  %v7355_v24 = vand.u32 4294901760, %v6330_v37  ;;  %v7361_v37 = vand.u32 4294901760, %v6484_v17  ;;  %v2091_v17 = vand.u32 4294901760, %v2042_v27 }
 0x307   :  { %5284 = vmatprep.subr.bf16.mxu0 %v7326_v1 }
 0x308   :  { %5382 = vmatpush3.bf16.msra.mxu1 %v6625_v21  ;;  %v6751_v60 = vsub.f32 %v2042_v27, %v2091_v17 }
 0x309   :  { %5383 = vmatprep.subr.bf16.mxu1 %v7326_v1 }
 0x30a   :  { %5286 = vmatpush3.bf16.msra.mxu0 %v5285_v0  ;;  %v5339_v0 = vpack.c.bf16 %v7358_v18, %v7357_v35  ;;  %v7311_v18 = vand.u32 4294901760, %v6600_v13 }
 0x30b   :  { %5287 = vmatprep.subr.bf16.mxu0 %v7326_v1 }
 0x30e   :  { %5289 = vmatpush3.bf16.msra.mxu0 %v5288_v61  ;;  %v5342_v61 = vpack.c.bf16 %v7360_v30, %v7359_v19  ;;  %v2177_v30 = vsub.f32 %v6600_v13, %v7311_v18 }
 0x30f   :  { %5290 = vmatprep.subr.bf16.mxu0 %v7326_v1 }
 0x312   :  { %5292 = vmatpush3.bf16.msra.mxu0 %v5291_v46 }
 0x313   :  { %5293 = vmatprep.subr.bf16.mxu0 %v7326_v1 }
 0x316   :  { %5295 = vmatpush3.bf16.msra.mxu0 %v5294_v44  ;;  %v2044_v44 = vld [vmem:[#allocation2 + $0x1f0] sm:$0xff] }
 0x317   :  { %5296 = vmatprep.subr.bf16.mxu0 %v7326_v1  ;;  %v2097_v20 = vand.u32 4294901760, %v2044_v44 }
 0x31a   :  { %5298 = vmatpush3.bf16.msra.mxu0 %v5297_v53  ;;  %v2045_v53 = vld [vmem:[#allocation2 + $0x1f8] sm:$0xff] }
 0x31b   :  { %5299 = vmatprep.subr.bf16.mxu0 %v7326_v1  ;;  %v2100_v12 = vand.u32 4294901760, %v2045_v53 }
 0x31d   :  { %4412 = vmatmul.mubr.f32.vlgmr.msra.gmra.mrb[2].mxu0 %v6569_v31  ;;  %v6758_v26 = vpack.c.bf16 %v2100_v12, %v2097_v20  ;;  %v6762_v54 = vsub.f32 %v2045_v53, %v2100_v12 }
 0x31e   :  { %5301 = vmatpush3.bf16.msra.mxu0 %v6304_v9  ;;  %4446 = vmatprep.mubr.msk.f32.mxu0 %vm5747_vm0, %v7321_v14 }
 0x31f   :  { %5302 = vmatprep.subr.bf16.mxu0 %v7326_v1 }
 0x322   :  { %5304 = vmatpush3.bf16.msra.mxu0 %v6312_v42 }
 0x323   :  { %5305 = vmatprep.subr.bf16.mxu0 %v7326_v1 }
 0x326   :  { %5307 = vmatpush3.bf16.msra.mxu0 %v6338_v11 }
 0x327   :  { %5308 = vmatprep.subr.bf16.mxu0 %v7326_v1 }
 0x32a   :  { %5310 = vmatpush3.bf16.msra.mxu0 %v6346_v63 }
 0x32b   :  { %5311 = vmatprep.subr.bf16.mxu0 %v7326_v1 }
 0x32e   :  { %5313 = vmatpush3.bf16.msra.mxu0 %v6354_v38 }
 0x32f   :  { %5314 = vmatprep.subr.bf16.mxu0 %v7326_v1 }
 0x332   :  { %5316 = vmatpush3.bf16.msra.mxu0 %v6457_v7 }
 0x333   :  { %5317 = vmatprep.subr.bf16.mxu0 %v7326_v1 }
 0x336   :  { %5319 = vmatpush3.bf16.msra.mxu0 %v6461_v57 }
 0x337   :  { %5320 = vmatprep.subr.bf16.mxu0 %v7326_v1 }
 0x33a   :  { %5322 = vmatpush3.bf16.msra.mxu0 %v6467_v51 }
 0x33b   :  { %5323 = vmatprep.subr.bf16.mxu0 %v7326_v1 }
 0x33d   :  { %4447 = vmatmul.mubr.f32.vlgmr.msra.gmra.mrb[2].mxu0 %v1469_v29  ;;  %v7356_v29 = vand.u32 4294901760, %v6332_v22  ;;  %v7362_v22 = vand.u32 4294901760, %v6486_v3  ;;  %v2094_v3 = vand.u32 4294901760, %v2043_v28 }
 0x33e   :  { %5325 = vmatpush3.bf16.msra.mxu0 %v5324_v39  ;;  %4481 = vmatprep.mubr.msk.f32.mxu0 %vm5747_vm0, %v7321_v14  ;;  %v6760_v39 = vsub.f32 %v2044_v44, %v2097_v20  ;;  %v7304_v20 = vand.u32 4294901760, %v6748_v15 }
 0x33f   :  { %5326 = vmatprep.subr.bf16.mxu0 %v7326_v1  ;;  %v5336_v31 = vpack.c.bf16 %v7356_v29, %v7355_v24  ;;  %v5345_v46 = vpack.c.bf16 %v7362_v22, %v7361_v37  ;;  %v6753_v43 = vsub.f32 %v2043_v28, %v2094_v3  ;;  %v2178_v37 = vand.u32 4294901760, %v2177_v30 }
 0x340   :  { %v2226_v55 = vsub.f32 %v6748_v15, %v7304_v20 }
 0x342   :  { %5328 = vmatpush3.bf16.msra.mxu0 %v5327_v33  ;;  %v2149_v33 = vsub.f32 %v6592_v52, %v2148_v36 }
 0x343   :  { %5329 = vmatprep.subr.bf16.mxu0 %v7326_v1 }
 0x344   :  { %v2150_v4 = vand.u32 4294901760, %v2149_v33 }
 0x346   :  { %5331 = vmatpush3.bf16.msra.mxu0 %v5330_v47  ;;  %v7312_v47 = vand.u32 4294901760, %v6598_v56  ;;  %v6780_v29 = vpack.c.bf16 %v2157_v10, %v2150_v4  ;;  %v2227_v10 = vand.u32 4294901760, %v2226_v55  ;;  %v5426_v55 = vpack.c.bf16 %v6605_v8, %v6600_v13 }
 0x347   :  { %5332 = vmatprep.subr.bf16.mxu0 %v7326_v1 }
 0x348   :  { %v2170_v24 = vsub.f32 %v6598_v56, %v7312_v47 }
 0x34a   :  { %5334 = vmatpush3.bf16.msra.mxu0 %v5333_v23  ;;  %v2163_v23 = vsub.f32 %v6596_v2, %v2162_v50  ;;  %v2171_v35 = vand.u32 4294901760, %v2170_v24  ;;  %v7302_v24 = vand.u32 4294901760, %v6753_v43 }
 0x34b   :  { %5335 = vmatprep.subr.bf16.mxu0 %v7326_v1 }
 0x34c   :  { %v2240_v30 = vsub.f32 %v6753_v43, %v7302_v24 }
 0x34e   :  { %5337 = vmatpush3.bf16.msra.mxu0 %v5336_v31  ;;  %v2164_v31 = vand.u32 4294901760, %v2163_v23  ;;  %v7303_v23 = vand.u32 4294901760, %v6751_v60 }
 0x34f   :  { %5338 = vmatprep.subr.bf16.mxu0 %v7326_v1 }
 0x350   :  { %v6784_v19 = vpack.c.bf16 %v2171_v35, %v2164_v31  ;;  %v2233_v35 = vsub.f32 %v6751_v60, %v7303_v23 }
 0x352   :  { %5340 = vmatpush3.bf16.msra.mxu0 %v5339_v0  ;;  %v7310_v0 = vand.u32 4294901760, %v6605_v8 }
 0x353   :  { %5341 = vmatprep.subr.bf16.mxu0 %v7326_v1 }
 0x356   :  { %5343 = vmatpush3.bf16.msra.mxu0 %v5342_v61  ;;  %v2184_v61 = vsub.f32 %v6605_v8, %v7310_v0 }
 0x357   :  { %5344 = vmatprep.subr.bf16.mxu0 %v7326_v1 }
 0x358   :  { %v2185_v22 = vand.u32 4294901760, %v2184_v61  ;;  %v2234_v61 = vand.u32 4294901760, %v2233_v35 }
 0x35a   :  { %5346 = vmatpush3.bf16.msra.mxu0 %v5345_v46  ;;  %v7309_v46 = vand.u32 4294901760, %v6609_v59 }
 0x35b   :  { %5347 = vmatprep.subr.bf16.mxu0 %v7326_v1 }
 0x35d   :  { %4482 = vmatmul.mubr.f32.vlgmr.msra.gmra.mrb[2].mxu0 %v6566_v16 }
 0x35e   :  { %5349 = vmatpush3.bf16.msra.mxu0 %v6304_v9  ;;  %4516 = vmatprep.mubr.msk.f32.mxu0 %vm5747_vm0, %v7321_v14  ;;  %v2039_v9 = vld [vmem:[#allocation2 + $0x1c8] sm:$0xff] }
 0x35f   :  { %5350 = vmatprep.subr.bf16.mxu0 %v7326_v1 }
 0x362   :  { %5352 = vmatpush3.bf16.msra.mxu0 %v6312_v42  ;;  %v2038_v42 = vld [vmem:[#allocation2 + $0x1c0] sm:$0xff] }
 0x363   :  { %5353 = vmatprep.subr.bf16.mxu0 %v7326_v1 }
 0x366   :  { %5355 = vmatpush3.bf16.msra.mxu0 %v6338_v11  ;;  %v2079_v11 = vand.u32 4294901760, %v2038_v42 }
 0x367   :  { %5356 = vmatprep.subr.bf16.mxu0 %v7326_v1 }
 0x368   :  { %v6742_v25 = vsub.f32 %v2038_v42, %v2079_v11  ;;  %v7308_v42 = vand.u32 4294901760, %v6611_v40 }
 0x36a   :  { %5358 = vmatpush3.bf16.msra.mxu0 %v6346_v63  ;;  %v2082_v63 = vand.u32 4294901760, %v2039_v9 }
 0x36b   :  { %5359 = vmatprep.subr.bf16.mxu0 %v7326_v1 }
 0x36c   :  { %v6744_v48 = vsub.f32 %v2039_v9, %v2082_v63  ;;  %v5402_v9 = vpack.c.bf16 %v2185_v22, %v2178_v37  ;;  %v2241_v37 = vand.u32 4294901760, %v2240_v30  ;;  %v7301_v22 = vand.u32 4294901760, %v6760_v39 }
 0x36d   :  { %v5438_v30 = vpack.c.bf16 %v6753_v43, %v6751_v60 }
 0x36e   :  { %5361 = vmatpush3.bf16.msra.mxu0 %v6354_v38  ;;  %v6732_v38 = vpack.c.bf16 %v2082_v63, %v2079_v11  ;;  %v2191_v11 = vsub.f32 %v6609_v59, %v7309_v46  ;;  %v2198_v63 = vsub.f32 %v6611_v40, %v7308_v42  ;;  %v2706_v42 = vld [vmem:[#allocation2 + $0x248] sm:$0xff] }
 0x36f   :  { %5362 = vmatprep.subr.bf16.mxu0 %v7326_v1 }
 0x370   :  { %5385 = vmatpush3.bf16.msra.mxu1 %v6732_v38  ;;  %v2199_v5 = vand.u32 4294901760, %v2198_v63  ;;  %v5414_v63 = vpack.c.bf16 %v2241_v37, %v2234_v61  ;;  %v5441_v61 = vpack.c.bf16 %v6762_v54, %v6760_v39  ;;  %v3374_v37 = vld [vmem:[%s7253_s2 + $0x2] ss:$0 sm:$0xff] }
 0x371   :  { %5386 = vmatprep.subr.bf16.mxu1 %v7326_v1 }
 0x372   :  { %5364 = vmatpush3.bf16.msra.mxu0 %v6457_v7  ;;  %v2040_v7 = vld [vmem:[#allocation2 + $0x1d0] sm:$0xff] }
 0x373   :  { %5365 = vmatprep.subr.bf16.mxu0 %v7326_v1 }
 0x376   :  { %5367 = vmatpush3.bf16.msra.mxu0 %v6461_v57  ;;  %v2085_v57 = vand.u32 4294901760, %v2040_v7 }
 0x377   :  { %5368 = vmatprep.subr.bf16.mxu0 %v7326_v1 }
 0x378   :  { %v6746_v34 = vsub.f32 %v2040_v7, %v2085_v57  ;;  %v2192_v7 = vand.u32 4294901760, %v2191_v11  ;;  %v7300_v11 = vand.u32 4294901760, %v6762_v54 }
 0x37a   :  { %5370 = vmatpush3.bf16.msra.mxu0 %v6467_v51  ;;  %v6736_v51 = vpack.c.bf16 %v2088_v6, %v2085_v57  ;;  %v7307_v57 = vand.u32 4294901760, %v6742_v25  ;;  %v7306_v6 = vand.u32 4294901760, %v6744_v48  ;;  %v5405_v27 = vpack.c.bf16 %v2199_v5, %v2192_v7 }
 0x37b   :  { %5515 = vmatprep.subr.bf16.mxu0 %v7326_v1  ;;  %v7305_v53 = vand.u32 4294901760, %v6746_v34  ;;  %v2247_v7 = vsub.f32 %v6760_v39, %v7301_v22  ;;  %v2254_v5 = vsub.f32 %v6762_v54, %v7300_v11  ;;  %v5435_v35 = vpack.c.bf16 %v6748_v15, %v6746_v34 }
 0x37c   :  { %5388 = vmatpush3.bf16.msra.mxu1 %v6736_v51  ;;  %v2205_v28 = vsub.f32 %v6742_v25, %v7307_v57 }
 0x37d   :  { %4517 = vmatmul.mubr.f32.vlgmr.msra.gmra.mrb[2].mxu0 %v6566_v16  ;;  %5389 = vmatprep.subr.bf16.mxu1 %v7326_v1  ;;  %v6740_v16 = vpack.c.bf16 %v2094_v3, %v2091_v17  ;;  %v2212_v17 = vsub.f32 %v6744_v48, %v7306_v6  ;;  %v2219_v33 = vsub.f32 %v6746_v34, %v7305_v53 }
 0x37e   :  { %4761 = vmatprep.mubr.msk.f32.mxu0 %vm5747_vm0, %v7321_v14  ;;  %v2206_v3 = vand.u32 4294901760, %v2205_v28  ;;  %v2248_v28 = vand.u32 4294901760, %v2247_v7 }
 0x37f   :  { %v2213_v44 = vand.u32 4294901760, %v2212_v17  ;;  %v2220_v4 = vand.u32 4294901760, %v2219_v33  ;;  %v2255_v17 = vand.u32 4294901760, %v2254_v5  ;;  %v5423_v33 = vpack.c.bf16 %v6598_v56, %v6596_v2 }
 0x380   :  { %5391 = vmatpush3.bf16.msra.mxu1 %v6740_v16  ;;  %v7367_v2 = vand.u32 4294901760, %v6611_v40 }
 0x381   :  { %5392 = vmatprep.subr.bf16.mxu1 %v7326_v1  ;;  %v5408_v12 = vpack.c.bf16 %v2213_v44, %v2206_v3  ;;  %v5411_v31 = vpack.c.bf16 %v2227_v10, %v2220_v4  ;;  %v5417_v3 = vpack.c.bf16 %v2255_v17, %v2248_v28  ;;  %v5420_v44 = vpack.c.bf16 %v6594_v62, %v6592_v52 }
 0x382   :  { %v5429_v4 = vpack.c.bf16 %v6611_v40, %v6609_v59  ;;  %v5432_v10 = vpack.c.bf16 %v6744_v48, %v6742_v25  ;;  %v7364_v52 = vand.u32 4294901760, %v6600_v13  ;;  %v7365_v62 = vand.u32 4294901760, %v6605_v8 }
 0x383   :  { %v7370_v8 = vand.u32 4294901760, %v6746_v34  ;;  %v7371_v13 = vand.u32 4294901760, %v6748_v15  ;;  %v7373_v40 = vand.u32 4294901760, %v6753_v43  ;;  %v2710_v15 = vld [vmem:[#allocation2 + $0x268] sm:$0xff]  ;;  %v2711_v43 = vld [vmem:[#allocation2 + $0x270] sm:$0xff] }
 0x384   :  { %5394 = vmatpush3.bf16.msra.mxu1 %v6758_v26 }
 0x385   :  { %5395 = vmatprep.subr.bf16.mxu1 %v7326_v1 }
 0x450   :  { %v2023_v7 = vpop.f32.mrb[2].mxu0 }
 0x451   :  { %v5662_v5 = vadd.f32 %v3374_v37, %v2023_v7  ;;  %v4518_v28 = vpop.f32.mrb[3].mxu0  ;;  %v2703_v7 = vld [vmem:[#allocation2 + $0x230] sm:$0xff] }
 0x452   :  { %v2705_v28 = vld [vmem:[#allocation2 + $0x240] sm:$0xff] }
 0x453   :  { %v2027_v17 = vmax.f32 %v5662_v5, 0.0  ;;  %v2704_v5 = vld [vmem:[#allocation2 + $0x238] sm:$0xff] }
 0x455   :  { %v6852_v11 = vadd.f32 %v2027_v17, %v6275_v41  ;;  %v2697_v41 = vld [vmem:[#allocation2 + $0x200] sm:$0xff] }
 0x457   :  { %v6855_v22 = vand.u32 4294901760, %v6852_v11 }
 0x459   :  { %v6859_v24 = vsub.f32 %v6852_v11, %v6855_v22 }
 0x45b   :  { %v2137_v23 = vand.u32 4294901760, %v6859_v24 }
 0x45d   :  { %v2138_v20 = vsub.f32 %v6859_v24, %v2137_v23 }
 0x45f   :  { %v2139_v53 = vand.u32 4294901760, %v2138_v20 }
 0x461   :  { %4552 = vmatmul.mubr.f32.vlgmr.msra.gmra.mrb[4].mxu1 %v2139_v53  ;;  %v2700_v53 = vld [vmem:[#allocation2 + $0x218] sm:$0xff] }
 0x462   :  { %5397 = vmatpush3.bf16.msra.mxu1 %v6780_v29  ;;  %4586 = vmatprep.mubr.msk.f32.mxu1 %vm5747_vm0, %v7321_v14  ;;  %v2698_v29 = vld [vmem:[#allocation2 + $0x208] sm:$0xff] }
 0x463   :  { %5398 = vmatprep.subr.bf16.mxu1 %v7326_v1 }
 0x466   :  { %5400 = vmatpush3.bf16.msra.mxu1 %v6784_v19  ;;  %v2699_v19 = vld [vmem:[#allocation2 + $0x210] sm:$0xff] }
 0x467   :  { %5401 = vmatprep.subr.bf16.mxu1 %v7326_v1  ;;  %v2728_v20 = vand.u32 4294901760, %v2699_v19 }
 0x469   :  { %v6887_v57 = vsub.f32 %v2699_v19, %v2728_v20  ;;  %v2749_v19 = vand.u32 4294901760, %v2706_v42 }
 0x46a   :  { %5403 = vmatpush3.bf16.msra.mxu1 %v5402_v9  ;;  %v2722_v9 = vand.u32 4294901760, %v2697_v41 }
 0x46b   :  { %5404 = vmatprep.subr.bf16.mxu1 %v7326_v1 }
 0x46e   :  { %5406 = vmatpush3.bf16.msra.mxu1 %v5405_v27  ;;  %v2725_v27 = vand.u32 4294901760, %v2698_v29 }
 0x46f   :  { %5407 = vmatprep.subr.bf16.mxu1 %v7326_v1 }
 0x470   :  { %v6881_v17 = vpack.c.bf16 %v2725_v27, %v2722_v9  ;;  %v6885_v6 = vsub.f32 %v2698_v29, %v2725_v27  ;;  %v2743_v29 = vand.u32 4294901760, %v2704_v5 }
 0x472   :  { %5409 = vmatpush3.bf16.msra.mxu1 %v5408_v12  ;;  %v2701_v12 = vld [vmem:[#allocation2 + $0x220] sm:$0xff]  ;;  %5517 = vmatpush3.bf16.msra.mxu0 %v6881_v17 }
 0x473   :  { %5410 = vmatprep.subr.bf16.mxu1 %v7326_v1  ;;  %5518 = vmatprep.subr.bf16.mxu0 %v7326_v1 }
 0x476   :  { %5412 = vmatpush3.bf16.msra.mxu1 %v5411_v31  ;;  %v2702_v31 = vld [vmem:[#allocation2 + $0x228] sm:$0xff] }
 0x477   :  { %5413 = vmatprep.subr.bf16.mxu1 %v7326_v1  ;;  %v2737_v37 = vand.u32 4294901760, %v2702_v31 }
 0x479   :  { %v6899_v47 = vsub.f32 %v2702_v31, %v2737_v37 }
 0x47a   :  { %5415 = vmatpush3.bf16.msra.mxu1 %v5414_v63  ;;  %v2731_v63 = vand.u32 4294901760, %v2700_v53 }
 0x47b   :  { %5416 = vmatprep.subr.bf16.mxu1 %v7326_v1 }
 0x47c   :  { %v6889_v46 = vpack.c.bf16 %v2731_v63, %v2728_v20  ;;  %v6891_v0 = vsub.f32 %v2700_v53, %v2731_v63  ;;  %v6905_v53 = vsub.f32 %v2704_v5, %v2743_v29  ;;  %v2822_v63 = vand.u32 4294901760, %v6885_v6 }
 0x47e   :  { %5418 = vmatpush3.bf16.msra.mxu1 %v5417_v3  ;;  %v2734_v3 = vand.u32 4294901760, %v2701_v12  ;;  %5520 = vmatpush3.bf16.msra.mxu0 %v6889_v46 }
 0x47f   :  { %5419 = vmatprep.subr.bf16.mxu1 %v7326_v1  ;;  %5521 = vmatprep.subr.bf16.mxu0 %v7326_v1 }
 0x480   :  { %v6893_v18 = vsub.f32 %v2701_v12, %v2734_v3  ;;  %v6909_v12 = vsub.f32 %v2706_v42, %v2749_v19 }
 0x481   :  { %4587 = vmatmul.mubr.f32.vlgmr.msra.gmra.mrb[4].mxu1 %v6855_v22 }
 0x482   :  { %5421 = vmatpush3.bf16.msra.mxu1 %v5420_v44  ;;  %4621 = vmatprep.mubr.msk.f32.mxu1 %vm5747_vm0, %v7321_v14  ;;  %v6883_v44 = vsub.f32 %v2697_v41, %v2722_v9  ;;  %v2740_v41 = vand.u32 4294901760, %v2703_v7  ;;  %v2746_v9 = vand.u32 4294901760, %v2705_v28 }
 0x483   :  { %5422 = vmatprep.subr.bf16.mxu1 %v7326_v1 }
 0x484   :  { %v6903_v27 = vsub.f32 %v2703_v7, %v2740_v41  ;;  %v6907_v20 = vsub.f32 %v2705_v28, %v2746_v9  ;;  %v6923_v42 = vpack.c.bf16 %v2743_v29, %v2740_v41  ;;  %v2823_v7 = vsub.f32 %v6885_v6, %v2822_v63 }
 0x486   :  { %5424 = vmatpush3.bf16.msra.mxu1 %v5423_v33  ;;  %v6915_v33 = vpack.c.bf16 %v2737_v37, %v2734_v3 }
 0x487   :  { %5425 = vmatprep.subr.bf16.mxu1 %v7326_v1 }
 0x488   :  { %5523 = vmatpush3.bf16.msra.mxu0 %v6915_v33 }
 0x489   :  { %5524 = vmatprep.subr.bf16.mxu0 %v7326_v1 }
 0x48a   :  { %5427 = vmatpush3.bf16.msra.mxu1 %v5426_v55  ;;  %v6931_v55 = vpack.c.bf16 %v2749_v19, %v2746_v9 }
 0x48b   :  { %5428 = vmatprep.subr.bf16.mxu1 %v7326_v1 }
 0x48c   :  { %5526 = vmatpush3.bf16.msra.mxu0 %v6923_v42 }
 0x48d   :  { %5527 = vmatprep.subr.bf16.mxu0 %v7326_v1 }
 0x48e   :  { %5430 = vmatpush3.bf16.msra.mxu1 %v5429_v4  ;;  %v5468_v4 = vpack.c.bf16 %v2155_v49, %v2148_v36  ;;  %v5474_v36 = vpack.c.bf16 %v7365_v62, %v7364_v52  ;;  %v7366_v49 = vand.u32 4294901760, %v6609_v59  ;;  %v7372_v59 = vand.u32 4294901760, %v6751_v60 }
 0x48f   :  { %5431 = vmatprep.subr.bf16.mxu1 %v7326_v1  ;;  %v2761_v60 = vand.u32 4294901760, %v2710_v15  ;;  %v2836_v52 = vand.u32 4294901760, %v6891_v0 }
 0x490   :  { %5529 = vmatpush3.bf16.msra.mxu0 %v6931_v55 }
 0x491   :  { %5530 = vmatprep.subr.bf16.mxu0 %v7326_v1  ;;  %v7055_v29 = vsub.f32 %v2710_v15, %v2761_v60 }
 0x492   :  { %5433 = vmatpush3.bf16.msra.mxu1 %v5432_v10  ;;  %v7363_v10 = vand.u32 4294901760, %v6598_v56  ;;  %v5477_v56 = vpack.c.bf16 %v7367_v2, %v7366_v49  ;;  %v2837_v49 = vsub.f32 %v6891_v0, %v2836_v52  ;;  %v2843_v2 = vand.u32 4294901760, %v6893_v18 }
 0x493   :  { %5434 = vmatprep.subr.bf16.mxu1 %v7326_v1 }
 0x496   :  { %5436 = vmatpush3.bf16.msra.mxu1 %v5435_v35  ;;  %v5471_v35 = vpack.c.bf16 %v7363_v10, %v2162_v50  ;;  %v7368_v50 = vand.u32 4294901760, %v6742_v25  ;;  %v7374_v25 = vand.u32 4294901760, %v6760_v39  ;;  %v2764_v39 = vand.u32 4294901760, %v2711_v43 }
 0x497   :  { %5437 = vmatprep.subr.bf16.mxu1 %v7326_v1  ;;  %v2824_v10 = vand.u32 4294901760, %v2823_v7 }
 0x498   :  { %v7058_v9 = vsub.f32 %v2711_v43, %v2764_v39 }
 0x49a   :  { %5439 = vmatpush3.bf16.msra.mxu1 %v5438_v30  ;;  %v5483_v30 = vpack.c.bf16 %v7371_v13, %v7370_v8 }
 0x49b   :  { %5440 = vmatprep.subr.bf16.mxu1 %v7326_v1 }
 0x49e   :  { %5442 = vmatpush3.bf16.msra.mxu1 %v5441_v61  ;;  %v5486_v61 = vpack.c.bf16 %v7373_v40, %v7372_v59  ;;  %v2857_v40 = vand.u32 4294901760, %v6903_v27 }
 0x49f   :  { %5443 = vmatprep.subr.bf16.mxu1 %v7326_v1 }
 0x4a1   :  { %4622 = vmatmul.mubr.f32.vlgmr.msra.gmra.mrb[4].mxu1 %v6859_v24 }
 0x4a2   :  { %5445 = vmatpush3.bf16.msra.mxu1 %v6590_v45  ;;  %4656 = vmatprep.mubr.msk.f32.mxu1 %vm5747_vm0, %v7321_v14 }
 0x4a3   :  { %5446 = vmatprep.subr.bf16.mxu1 %v7326_v1 }
 0x4a6   :  { %5448 = vmatpush3.bf16.msra.mxu1 %v6603_v58 }
 0x4a7   :  { %5449 = vmatprep.subr.bf16.mxu1 %v7326_v1 }
 0x4aa   :  { %5451 = vmatpush3.bf16.msra.mxu1 %v6617_v32 }
 0x4ab   :  { %5452 = vmatprep.subr.bf16.mxu1 %v7326_v1 }
 0x4ae   :  { %5454 = vmatpush3.bf16.msra.mxu1 %v6625_v21 }
 0x4af   :  { %5455 = vmatprep.subr.bf16.mxu1 %v7326_v1 }
 0x4b2   :  { %5457 = vmatpush3.bf16.msra.mxu1 %v6732_v38 }
 0x4b3   :  { %5458 = vmatprep.subr.bf16.mxu1 %v7326_v1 }
 0x4b6   :  { %5460 = vmatpush3.bf16.msra.mxu1 %v6736_v51 }
 0x4b7   :  { %5461 = vmatprep.subr.bf16.mxu1 %v7326_v1 }
 0x4ba   :  { %5463 = vmatpush3.bf16.msra.mxu1 %v6740_v16 }
 0x4bb   :  { %5464 = vmatprep.subr.bf16.mxu1 %v7326_v1 }
 0x4be   :  { %5466 = vmatpush3.bf16.msra.mxu1 %v6758_v26 }
 0x4bf   :  { %5467 = vmatprep.subr.bf16.mxu1 %v7326_v1 }
 0x4c1   :  { %4657 = vmatmul.mubr.f32.vlgmr.msra.gmra.mrb[4].mxu1 %v2137_v23  ;;  %v7369_v23 = vand.u32 4294901760, %v6744_v48  ;;  %v7375_v48 = vand.u32 4294901760, %v6762_v54 }
 0x4c2   :  { %5469 = vmatpush3.bf16.msra.mxu1 %v5468_v4  ;;  %4691 = vmatprep.mubr.msk.f32.mxu1 %vm5747_vm0, %v7321_v14 }
 0x4c3   :  { %5470 = vmatprep.subr.bf16.mxu1 %v7326_v1  ;;  %v5480_v24 = vpack.c.bf16 %v7369_v23, %v7368_v50  ;;  %v5489_v31 = vpack.c.bf16 %v7375_v48, %v7374_v25  ;;  %v2838_v23 = vand.u32 4294901760, %v2837_v49  ;;  %v2858_v48 = vsub.f32 %v6903_v27, %v2857_v40 }
 0x4c4   :  { %v7315_v49 = vand.u32 4294901760, %v7055_v29 }
 0x4c6   :  { %5472 = vmatpush3.bf16.msra.mxu1 %v5471_v35  ;;  %v2829_v35 = vand.u32 4294901760, %v6887_v57 }
 0x4c7   :  { %5473 = vmatprep.subr.bf16.mxu1 %v7326_v1 }
 0x4ca   :  { %5475 = vmatpush3.bf16.msra.mxu1 %v5474_v36  ;;  %v2830_v36 = vsub.f32 %v6887_v57, %v2829_v35 }
 0x4cb   :  { %5476 = vmatprep.subr.bf16.mxu1 %v7326_v1 }
 0x4cc   :  { %v2831_v50 = vand.u32 4294901760, %v2830_v36 }
 0x4ce   :  { %5478 = vmatpush3.bf16.msra.mxu1 %v5477_v56  ;;  %v2850_v56 = vand.u32 4294901760, %v6899_v47  ;;  %v5543_v13 = vpack.c.bf16 %v2838_v23, %v2831_v50 }
 0x4cf   :  { %5479 = vmatprep.subr.bf16.mxu1 %v7326_v1 }
 0x4d0   :  { %v2851_v8 = vsub.f32 %v6899_v47, %v2850_v56 }
 0x4d2   :  { %5481 = vmatpush3.bf16.msra.mxu1 %v5480_v24  ;;  %v2844_v24 = vsub.f32 %v6893_v18, %v2843_v2  ;;  %v2852_v59 = vand.u32 4294901760, %v2851_v8 }
 0x4d3   :  { %5482 = vmatprep.subr.bf16.mxu1 %v7326_v1 }
 0x4d6   :  { %5484 = vmatpush3.bf16.msra.mxu1 %v5483_v30  ;;  %v2845_v30 = vand.u32 4294901760, %v2844_v24  ;;  %v2907_v24 = vsub.f32 %v7055_v29, %v7315_v49 }
 0x4d7   :  { %5485 = vmatprep.subr.bf16.mxu1 %v7326_v1 }
 0x4d8   :  { %v5546_v25 = vpack.c.bf16 %v2852_v59, %v2845_v30  ;;  %v2908_v30 = vand.u32 4294901760, %v2907_v24  ;;  %v7314_v59 = vand.u32 4294901760, %v7058_v9 }
 0x4da   :  { %5487 = vmatpush3.bf16.msra.mxu1 %v5486_v61  ;;  %v2864_v61 = vand.u32 4294901760, %v6905_v53 }
 0x4db   :  { %5488 = vmatprep.subr.bf16.mxu1 %v7326_v1 }
 0x4de   :  { %5490 = vmatpush3.bf16.msra.mxu1 %v5489_v31  ;;  %v2865_v31 = vsub.f32 %v6905_v53, %v2864_v61 }
 0x4df   :  { %5491 = vmatprep.subr.bf16.mxu1 %v7326_v1 }
 0x4e1   :  { %4692 = vmatmul.mubr.f32.vlgmr.msra.gmra.mrb[4].mxu1 %v6855_v22 }
 0x4e2   :  { %5493 = vmatpush3.bf16.msra.mxu1 %v6590_v45  ;;  %4726 = vmatprep.mubr.msk.f32.mxu1 %vm5747_vm0, %v7321_v14  ;;  %v2708_v45 = vld [vmem:[#allocation2 + $0x258] sm:$0xff] }
 0x4e3   :  { %5494 = vmatprep.subr.bf16.mxu1 %v7326_v1 }
 0x4e6   :  { %5496 = vmatpush3.bf16.msra.mxu1 %v6603_v58  ;;  %v2707_v58 = vld [vmem:[#allocation2 + $0x250] sm:$0xff] }
 0x4e7   :  { %5497 = vmatprep.subr.bf16.mxu1 %v7326_v1 }
 0x4ea   :  { %5499 = vmatpush3.bf16.msra.mxu1 %v6617_v32  ;;  %v2752_v32 = vand.u32 4294901760, %v2707_v58 }
 0x4eb   :  { %5500 = vmatprep.subr.bf16.mxu1 %v7326_v1 }
 0x4ec   :  { %v7049_v5 = vsub.f32 %v2707_v58, %v2752_v32  ;;  %v2859_v58 = vand.u32 4294901760, %v2858_v48 }
 0x4ee   :  { %5502 = vmatpush3.bf16.msra.mxu1 %v6625_v21  ;;  %v2755_v21 = vand.u32 4294901760, %v2708_v45 }
 0x4ef   :  { %5503 = vmatprep.subr.bf16.mxu1 %v7326_v1 }
 0x4f0   :  { %v7031_v34 = vpack.c.bf16 %v2755_v21, %v2752_v32  ;;  %v7051_v28 = vsub.f32 %v2708_v45, %v2755_v21  ;;  %v2866_v45 = vand.u32 4294901760, %v2865_v31  ;;  %v2871_v32 = vand.u32 4294901760, %v6907_v20 }
 0x4f1   :  { %v2878_v21 = vand.u32 4294901760, %v6909_v12 }
 0x4f2   :  { %5505 = vmatpush3.bf16.msra.mxu1 %v6732_v38  ;;  %v2709_v38 = vld [vmem:[#allocation2 + $0x260] sm:$0xff]  ;;  %5532 = vmatpush3.bf16.msra.mxu0 %v7031_v34  ;;  %v2872_v15 = vsub.f32 %v6907_v20, %v2871_v32 }
 0x4f3   :  { %5506 = vmatprep.subr.bf16.mxu1 %v7326_v1  ;;  %5533 = vmatprep.subr.bf16.mxu0 %v7326_v1 }
 0x4f6   :  { %5508 = vmatpush3.bf16.msra.mxu1 %v6736_v51  ;;  %v2758_v51 = vand.u32 4294901760, %v2709_v38 }
 0x4f7   :  { %5509 = vmatprep.subr.bf16.mxu1 %v7326_v1 }
 0x4f8   :  { %v7053_v41 = vsub.f32 %v2709_v38, %v2758_v51  ;;  %v5549_v38 = vpack.c.bf16 %v2866_v45, %v2859_v58  ;;  %v2914_v58 = vsub.f32 %v7058_v9, %v7314_v59 }
 0x4fa   :  { %5511 = vmatpush3.bf16.msra.mxu1 %v6740_v16  ;;  %v7035_v16 = vpack.c.bf16 %v2761_v60, %v2758_v51  ;;  %v2879_v51 = vsub.f32 %v6909_v12, %v2878_v21  ;;  %v2873_v60 = vand.u32 4294901760, %v2872_v15  ;;  %v7316_v36 = vand.u32 4294901760, %v7053_v41 }
 0x4fb   :  { %5512 = vmatprep.subr.bf16.mxu1 %v7326_v1  ;;  %v2915_v15 = vand.u32 4294901760, %v2914_v58  ;;  %v5582_v24 = vpack.c.bf16 %v7055_v29, %v7053_v41 }
 0x4fc   :  { %5535 = vmatpush3.bf16.msra.mxu0 %v7035_v16  ;;  %v2880_v43 = vand.u32 4294901760, %v2879_v51  ;;  %v2900_v23 = vsub.f32 %v7053_v41, %v7316_v36 }
 0x4fd   :  { %5536 = vmatprep.subr.bf16.mxu0 %v7326_v1 }
 0x4fe   :  { %5514 = vmatpush3.bf16.msra.mxu1 %v6758_v26  ;;  %v2712_v26 = vld [vmem:[#allocation2 + $0x278] sm:$0xff]  ;;  %v2901_v8 = vand.u32 4294901760, %v2900_v23  ;;  %v5579_v23 = vpack.c.bf16 %v7051_v28, %v7049_v5 }
 0x4ff   :  { %v2767_v54 = vand.u32 4294901760, %v2712_v26 }
 0x500   :  { %v5558_v31 = vpack.c.bf16 %v2908_v30, %v2901_v8  ;;  %v3376_v30 = vld [vmem:[%s7253_s2 + $0x3] ss:$0 sm:$0xff] }
 0x501   :  { %4727 = vmatmul.mubr.f32.vlgmr.msra.gmra.mrb[4].mxu1 %v6855_v22  ;;  %v2815_v22 = vand.u32 4294901760, %v6883_v44  ;;  %v7041_v3 = vpack.c.bf16 %v2767_v54, %v2764_v39  ;;  %v7060_v19 = vsub.f32 %v2712_v26, %v2767_v54  ;;  %v2885_v26 = vand.u32 4294901760, %v7049_v5 }
 0x502   :  { %v7317_v39 = vand.u32 4294901760, %v7051_v28  ;;  %v5552_v54 = vpack.c.bf16 %v2880_v43, %v2873_v60  ;;  %v5564_v43 = vpack.c.bf16 %v6885_v6, %v6883_v44  ;;  %v5618_v6 = vpack.c.bf16 %v2850_v56, %v2843_v2 }
 0x503   :  { %v2816_v37 = vsub.f32 %v6883_v44, %v2815_v22  ;;  %5538 = vmatpush3.bf16.msra.mxu0 %v7041_v3  ;;  %v7313_v48 = vand.u32 4294901760, %v7060_v19  ;;  %v5585_v8 = vpack.c.bf16 %v7060_v19, %v7058_v9  ;;  %v7377_v44 = vand.u32 4294901760, %v7053_v41 }
 0x504   :  { %5539 = vmatprep.subr.bf16.mxu0 %v7326_v1  ;;  %v2893_v7 = vsub.f32 %v7051_v28, %v7317_v39 }
 0x505   :  { %v2817_v4 = vand.u32 4294901760, %v2816_v37  ;;  %v2886_v37 = vsub.f32 %v7049_v5, %v2885_v26  ;;  %v2921_v45 = vsub.f32 %v7060_v19, %v7313_v48 }
 0x507   :  { %v7065_v62 = vpack.c.bf16 %v2824_v10, %v2817_v4  ;;  %v2887_v4 = vand.u32 4294901760, %v2886_v37  ;;  %v2894_v10 = vand.u32 4294901760, %v2893_v7  ;;  %v2922_v51 = vand.u32 4294901760, %v2921_v45 }
 0x508   :  { %v5567_v37 = vpack.c.bf16 %v6891_v0, %v6887_v57  ;;  %v5570_v7 = vpack.c.bf16 %v6899_v47, %v6893_v18  ;;  %v5621_v0 = vpack.c.bf16 %v2864_v61, %v2857_v40  ;;  %v5624_v57 = vpack.c.bf16 %v2878_v21, %v2871_v32 }
 0x509   :  { %v5555_v50 = vpack.c.bf16 %v2894_v10, %v2887_v4  ;;  %v5561_v60 = vpack.c.bf16 %v2922_v51, %v2915_v15  ;;  %v5573_v4 = vpack.c.bf16 %v6905_v53, %v6903_v27  ;;  %v5576_v10 = vpack.c.bf16 %v6909_v12, %v6907_v20 }
 0x50a   :  { %v7376_v47 = vand.u32 4294901760, %v7051_v28  ;;  %v7378_v27 = vand.u32 4294901760, %v7055_v29  ;;  %v7379_v20 = vand.u32 4294901760, %v7058_v9  ;;  %v7380_v12 = vand.u32 4294901760, %v7060_v19 }
 0x50c   :  { %v5627_v18 = vpack.c.bf16 %v7376_v47, %v2885_v26  ;;  %v5630_v53 = vpack.c.bf16 %v7378_v27, %v7377_v44 }
 0x5d4   :  { %v2691_v58 = vpop.f32.mrb[4].mxu1 }
 0x5d5   :  { %v5663_v45 = vadd.f32 %v3376_v30, %v2691_v58  ;;  %v4728_v15 = vpop.f32.mrb[5].mxu1 }
 0x5d7   :  { %v2695_v51 = vmax.f32 %v5663_v45, 0.0 }
 0x5d9   :  { %v7140_v48 = vand.u32 4294901760, %v2695_v51 }
 0x5db   :  { %v2803_v59 = vsub.f32 %v2695_v51, %v7140_v48 }
 0x5dd   :  { %v2804_v49 = vand.u32 4294901760, %v2803_v59 }
 0x5df   :  { %v2805_v36 = vsub.f32 %v2803_v59, %v2804_v49 }
 0x5e1   :  { %v2806_v39 = vand.u32 4294901760, %v2805_v36 }
 0x5e3   :  { %4762 = vmatmul.mubr.f32.vlgmr.msra.gmra.mrb[4].mxu0 %v2806_v39 }
 0x5e4   :  { %5541 = vmatpush3.bf16.msra.mxu0 %v7065_v62  ;;  %4796 = vmatprep.mubr.msk.f32.mxu0 %vm5747_vm0, %v7321_v14  ;;  %v5612_v62 = vpack.c.bf16 %v2822_v63, %v2815_v22  ;;  %v5633_v22 = vpack.c.bf16 %v7380_v12, %v7379_v20 }
 0x5e5   :  { %5542 = vmatprep.subr.bf16.mxu0 %v7326_v1 }
 0x5e8   :  { %5544 = vmatpush3.bf16.msra.mxu0 %v5543_v13  ;;  %v5615_v13 = vpack.c.bf16 %v2836_v52, %v2829_v35 }
 0x5e9   :  { %5545 = vmatprep.subr.bf16.mxu0 %v7326_v1 }
 0x5ec   :  { %5547 = vmatpush3.bf16.msra.mxu0 %v5546_v25 }
 0x5ed   :  { %5548 = vmatprep.subr.bf16.mxu0 %v7326_v1 }
 0x5f0   :  { %5550 = vmatpush3.bf16.msra.mxu0 %v5549_v38 }
 0x5f1   :  { %5551 = vmatprep.subr.bf16.mxu0 %v7326_v1 }
 0x5f4   :  { %5553 = vmatpush3.bf16.msra.mxu0 %v5552_v54 }
 0x5f5   :  { %5554 = vmatprep.subr.bf16.mxu0 %v7326_v1 }
 0x5f8   :  { %5556 = vmatpush3.bf16.msra.mxu0 %v5555_v50 }
 0x5f9   :  { %5557 = vmatprep.subr.bf16.mxu0 %v7326_v1 }
 0x5fc   :  { %5559 = vmatpush3.bf16.msra.mxu0 %v5558_v31 }
 0x5fd   :  { %5560 = vmatprep.subr.bf16.mxu0 %v7326_v1 }
 0x600   :  { %5562 = vmatpush3.bf16.msra.mxu0 %v5561_v60 }
 0x601   :  { %5563 = vmatprep.subr.bf16.mxu0 %v7326_v1 }
 0x603   :  { %4797 = vmatmul.mubr.f32.vlgmr.msra.gmra.mrb[4].mxu0 %v7140_v48 }
 0x604   :  { %5565 = vmatpush3.bf16.msra.mxu0 %v5564_v43  ;;  %4831 = vmatprep.mubr.msk.f32.mxu0 %vm5747_vm0, %v7321_v14 }
 0x605   :  { %5566 = vmatprep.subr.bf16.mxu0 %v7326_v1 }
 0x608   :  { %5568 = vmatpush3.bf16.msra.mxu0 %v5567_v37 }
 0x609   :  { %5569 = vmatprep.subr.bf16.mxu0 %v7326_v1 }
 0x60c   :  { %5571 = vmatpush3.bf16.msra.mxu0 %v5570_v7 }
 0x60d   :  { %5572 = vmatprep.subr.bf16.mxu0 %v7326_v1 }
 0x610   :  { %5574 = vmatpush3.bf16.msra.mxu0 %v5573_v4 }
 0x611   :  { %5575 = vmatprep.subr.bf16.mxu0 %v7326_v1 }
 0x614   :  { %5577 = vmatpush3.bf16.msra.mxu0 %v5576_v10 }
 0x615   :  { %5578 = vmatprep.subr.bf16.mxu0 %v7326_v1 }
 0x618   :  { %5580 = vmatpush3.bf16.msra.mxu0 %v5579_v23 }
 0x619   :  { %5581 = vmatprep.subr.bf16.mxu0 %v7326_v1 }
 0x61c   :  { %5583 = vmatpush3.bf16.msra.mxu0 %v5582_v24 }
 0x61d   :  { %5584 = vmatprep.subr.bf16.mxu0 %v7326_v1 }
 0x620   :  { %5586 = vmatpush3.bf16.msra.mxu0 %v5585_v8 }
 0x621   :  { %5587 = vmatprep.subr.bf16.mxu0 %v7326_v1 }
 0x623   :  { %4832 = vmatmul.mubr.f32.vlgmr.msra.gmra.mrb[4].mxu0 %v2803_v59 }
 0x624   :  { %5589 = vmatpush3.bf16.msra.mxu0 %v6881_v17  ;;  %4866 = vmatprep.mubr.msk.f32.mxu0 %vm5747_vm0, %v7321_v14 }
 0x625   :  { %5590 = vmatprep.subr.bf16.mxu0 %v7326_v1 }
 0x628   :  { %5592 = vmatpush3.bf16.msra.mxu0 %v6889_v46 }
 0x629   :  { %5593 = vmatprep.subr.bf16.mxu0 %v7326_v1 }
 0x62c   :  { %5595 = vmatpush3.bf16.msra.mxu0 %v6915_v33 }
 0x62d   :  { %5596 = vmatprep.subr.bf16.mxu0 %v7326_v1 }
 0x630   :  { %5598 = vmatpush3.bf16.msra.mxu0 %v6923_v42 }
 0x631   :  { %5599 = vmatprep.subr.bf16.mxu0 %v7326_v1 }
 0x634   :  { %5601 = vmatpush3.bf16.msra.mxu0 %v6931_v55 }
 0x635   :  { %5602 = vmatprep.subr.bf16.mxu0 %v7326_v1 }
 0x638   :  { %5604 = vmatpush3.bf16.msra.mxu0 %v7031_v34 }
 0x639   :  { %5605 = vmatprep.subr.bf16.mxu0 %v7326_v1 }
 0x63c   :  { %5607 = vmatpush3.bf16.msra.mxu0 %v7035_v16 }
 0x63d   :  { %5608 = vmatprep.subr.bf16.mxu0 %v7326_v1 }
 0x640   :  { %5610 = vmatpush3.bf16.msra.mxu0 %v7041_v3 }
 0x641   :  { %5611 = vmatprep.subr.bf16.mxu0 %v7326_v1 }
 0x643   :  { %4867 = vmatmul.mubr.f32.vlgmr.msra.gmra.mrb[4].mxu0 %v2804_v49 }
 0x644   :  { %5613 = vmatpush3.bf16.msra.mxu0 %v5612_v62  ;;  %4901 = vmatprep.mubr.msk.f32.mxu0 %vm5747_vm0, %v7321_v14 }
 0x645   :  { %5614 = vmatprep.subr.bf16.mxu0 %v7326_v1 }
 0x648   :  { %5616 = vmatpush3.bf16.msra.mxu0 %v5615_v13 }
 0x649   :  { %5617 = vmatprep.subr.bf16.mxu0 %v7326_v1 }
 0x64c   :  { %5619 = vmatpush3.bf16.msra.mxu0 %v5618_v6 }
 0x64d   :  { %5620 = vmatprep.subr.bf16.mxu0 %v7326_v1 }
 0x650   :  { %5622 = vmatpush3.bf16.msra.mxu0 %v5621_v0 }
 0x651   :  { %5623 = vmatprep.subr.bf16.mxu0 %v7326_v1 }
 0x654   :  { %5625 = vmatpush3.bf16.msra.mxu0 %v5624_v57 }
 0x655   :  { %5626 = vmatprep.subr.bf16.mxu0 %v7326_v1 }
 0x658   :  { %5628 = vmatpush3.bf16.msra.mxu0 %v5627_v18 }
 0x659   :  { %5629 = vmatprep.subr.bf16.mxu0 %v7326_v1 }
 0x65c   :  { %5631 = vmatpush3.bf16.msra.mxu0 %v5630_v53 }
 0x65d   :  { %5632 = vmatprep.subr.bf16.mxu0 %v7326_v1 }
 0x660   :  { %5634 = vmatpush3.bf16.msra.mxu0 %v5633_v22 }
 0x661   :  { %5635 = vmatprep.subr.bf16.mxu0 %v7326_v1 }
 0x663   :  { %4902 = vmatmul.mubr.f32.vlgmr.msra.gmra.mrb[4].mxu0 %v7140_v48 }
 0x664   :  { %5637 = vmatpush3.bf16.msra.mxu0 %v6881_v17  ;;  %4936 = vmatprep.mubr.msk.f32.mxu0 %vm5747_vm0, %v7321_v14  ;;  %v3378_v14 = vld [vmem:[%s7253_s2 + $0x4] ss:$0 sm:$0xff] }
 0x665   :  { %5638 = vmatprep.subr.bf16.mxu0 %v7326_v1 }
 0x668   :  { %5640 = vmatpush3.bf16.msra.mxu0 %v6889_v46 }
 0x669   :  { %5641 = vmatprep.subr.bf16.mxu0 %v7326_v1 }
 0x66c   :  { %5643 = vmatpush3.bf16.msra.mxu0 %v6915_v33 }
 0x66d   :  { %5644 = vmatprep.subr.bf16.mxu0 %v7326_v1 }
 0x670   :  { %5646 = vmatpush3.bf16.msra.mxu0 %v6923_v42 }
 0x671   :  { %5647 = vmatprep.subr.bf16.mxu0 %v7326_v1 }
 0x674   :  { %5649 = vmatpush3.bf16.msra.mxu0 %v6931_v55 }
 0x675   :  { %5650 = vmatprep.subr.bf16.mxu0 %v7326_v1 }
 0x678   :  { %5652 = vmatpush3.bf16.msra.mxu0 %v7031_v34 }
 0x679   :  { %5653 = vmatprep.subr.bf16.mxu0 %v7326_v1 }
 0x67c   :  { %5655 = vmatpush3.bf16.msra.mxu0 %v7035_v16 }
 0x67d   :  { %5656 = vmatprep.subr.bf16.mxu0 %v7326_v1 }
 0x680   :  { %5658 = vmatpush3.bf16.msra.mxu0 %v7041_v3 }
 0x683   :  { %4937 = vmatmul.mubr.f32.vlgmr.msra.gmra.mrb[4].mxu0 %v7140_v48 }
 0x756   :  { %v3358_v46 = vpop.f32.mrb[4].mxu0 }
 0x757   :  { %v5664_v17 = vadd.f32 %v3378_v14, %v3358_v46  ;;  %v4938_v33 = vpop.f32.mrb[5].mxu0 }
 0x759   :  { %v3362_v42 = vmax.f32 %v5664_v17, 0.0 }
 0x75b   :  { %v3363_v55 = vadd.f32 %v3362_v42, %v6852_v11 }
 0x75d   :  { %3364 = vst [vmem:[%s7254_s3] sm:$0xff] %v3363_v55 }
 0x75e   :  { %3369 = vsyncpa [#allocation3], 1 }

</bundles_post_ra>
